<compile_context>
chip_gen: v5e
topology: v5e:2x2
jax: 0.10.0
libtpu: 0.0.40
codegen_flags: <defaults>
</compile_context>

<pallas_src>
import functools
import math

import jax
import jax.numpy as jnp
from jax import lax
from jax.experimental import pallas as pl
from jax.experimental.pallas import tpu as pltpu


# ---------------------------------------------------------------------------
# Fused Pallas kernel: batch-blocked pos/neg cross-attention + projections
# ---------------------------------------------------------------------------
def _posneg_prompt_kernel(x_ref, pe_ref, q_ref, wk_ref, bk_ref, wv_ref, bv_ref,
                          wop_ref, bout_ref, pos_ref, neg_ref,
                          *, num_heads, head_dim):
    # x_ref   : (TB, Lk, Dh) f32   TB batch elements of x
    # pe_ref  : (Lk, Dh)     f32   props_pe
    # q_ref   : (H, Lq, hd)  bf16  precomputed Q heads (batch-invariant)
    # wk_ref  : (Dh, Dh)     bf16  Wk^T (so rows @ wk_ref)
    # bk_ref  : (1, Dh)      f32
    # wv_ref  : (Dh, Dh)     bf16  Wv^T
    # bv_ref  : (1, Dh)      f32
    # wop_ref : (H, hd, E)   bf16  fused per-head Wo^T @ Wp^T slabs
    # bout_ref: (1, E)       f32   folded bias = bo @ Wp^T + bp
    # pos_ref : (TB, Lq, E)        positive prompts output
    # neg_ref : (TB, Lq, E)        negative prompts output
    f32 = jnp.float32
    bf16 = jnp.bfloat16
    scale = 1.0 / math.sqrt(head_dim)

    tb, lk, dh = x_ref.shape
    lq = q_ref.shape[1]
    e = wop_ref.shape[2]

    # Fused "x + props_pe" (f32 add), bf16 operands for the MXU.
    xk = (x_ref[...] + pe_ref[...]).astype(bf16)            # (TB, Lk, Dh)
    xk2 = xk.reshape(tb * lk, dh)                            # layout-preserving merge

    # Full-width K/V projections: one lane-dense (TB*Lk, Dh)x(Dh, Dh) each.
    k_all = (jnp.dot(xk2, wk_ref[...], preferred_element_type=f32)
             + bk_ref[...]).astype(bf16).reshape(tb, lk, dh)
    v_all = (jnp.dot(xk2, wv_ref[...], preferred_element_type=f32)
             + bv_ref[...]).astype(bf16).reshape(tb, lk, dh)

    # Batch-broadcast queries once (hoisted out of the head loop).
    q_all = jnp.broadcast_to(q_ref[...][None],
                             (tb, num_heads, lq, head_dim))  # (TB, H, Lq, hd)

    # Accumulate pos/neg directly in E space (Wo@Wp^T folded per head),
    # stacked along rows so each head issues ONE ctx + ONE out-proj matmul.
    acc = jnp.zeros((tb * 2 * lq, e), f32)

    # TODO(synk): for H >= 8 at production scale, convert to
    # lax.fori_loop(..., unroll=True) to bound per-head live ranges.
    for h in range(num_heads):
        lo = h * head_dim
        k_h = k_all[:, :, lo:lo + head_dim]                  # (TB, Lk, hd) bf16
        v_h = v_all[:, :, lo:lo + head_dim]                  # (TB, Lk, hd) bf16
        q_h = q_all[:, h]                                    # (TB, Lq, hd) bf16

        # scores = q @ k^T / sqrt(head_dim), f32 accumulation
        s = jnp.einsum('bqd,bkd->bqk', q_h, k_h,
                       preferred_element_type=f32) * scale   # (TB, Lq, Lk)

        # positive attention = softmax over keys (f32, EUP reciprocal)
        m = jnp.max(s, axis=-1, keepdims=True)
        ex = jnp.exp(s - m)
        pos_w = ex * pl.reciprocal(jnp.sum(ex, axis=-1, keepdims=True),
                                   approx=True)

        # negative attention: renormalized complement, clamped, renormalized.
        one_m = 1.0 - pos_w
        neg_w = one_m * pl.reciprocal(jnp.sum(one_m, axis=-1, keepdims=True),
                                      approx=True)
        # epsilon-sensitive clamp stays an exact divide
        neg_w = jnp.minimum(neg_w, 1e-6 / (pos_w + 1e-10))
        neg_w = neg_w * pl.reciprocal(jnp.sum(neg_w, axis=-1, keepdims=True),
                                      approx=True)

        # Fused pos/neg tail: stack weights -> one ctx matmul, one out-proj.
        w_both = jnp.concatenate([pos_w, neg_w], axis=1).astype(bf16)  # (TB,2Lq,Lk)
        ctx = jnp.einsum('bqk,bkd->bqd', w_both, v_h,
                         preferred_element_type=f32).astype(bf16)      # (TB,2Lq,hd)
        acc = acc + jnp.dot(ctx.reshape(tb * 2 * lq, head_dim), wop_ref[h],
                            preferred_element_type=f32)                # (TB*2Lq, E)

    out = (acc + bout_ref[...]).reshape(tb, 2 * lq, e)
    pos_ref[...] = out[:, :lq, :].astype(pos_ref.dtype)
    neg_ref[...] = out[:, lq:, :].astype(neg_ref.dtype)


# ---------------------------------------------------------------------------
# Parameters (mirrors the torch module; norm=0 path, so LayerNorm unused)
# ---------------------------------------------------------------------------
class QKVOrthoPosNegPromptGParams:
    def __init__(self, key, embed_num, embed_dim, prompt_num_s, prompt_num_m,
                 proj_hidd_dim, pos_promptLen=1, neg_promptLen=1,
                 pos_promptLayers=12, neg_promptLayers=12, nhead=8,
                 ortho_prompt_after=0):
        self.embed_num = embed_num
        self.embed_dim = embed_dim
        self.prompt_num_s = prompt_num_s
        self.prompt_num_m = prompt_num_m
        self.proj_hidd_dim = proj_hidd_dim
        self.pos_prompt_len = pos_promptLen
        self.neg_prompt_len = neg_promptLen
        self.pos_prompt_layers = pos_promptLayers
        self.neg_prompt_layers = neg_promptLayers
        self.nhead = nhead
        self.ortho_prompt_after = ortho_prompt_after

        Dh, E = proj_hidd_dim, embed_dim
        Lq = pos_promptLen * pos_promptLayers
        Lk = prompt_num_s + prompt_num_m
        ks = jax.random.split(key, 12)
        norm = lambda k, shp: jax.random.normal(k, shp, jnp.float32) * 0.02

        # PosNegCrossAttention linears (query/key/value/out), each Dh -> Dh.
        self.wq = norm(ks[0], (Dh, Dh)); self.bq = norm(ks[1], (Dh,))
        self.wk = norm(ks[2], (Dh, Dh)); self.bk = norm(ks[3], (Dh,))
        self.wv = norm(ks[4], (Dh, Dh)); self.bv = norm(ks[5], (Dh,))
        self.wo = norm(ks[6], (Dh, Dh)); self.bo = norm(ks[7], (Dh,))
        # Learned prompt embeddings (queries) and props positional embedding.
        self.pos_prompt_embeddings = norm(ks[8], (1, Lq, Dh))
        self.props_pe = norm(ks[9], (1, Lk, Dh))
        # Final projection proj_hidd_dim -> embed_dim.
        self.wp = norm(ks[10], (E, Dh)); self.bp = norm(ks[11], (E,))
        # cls_token exists in the torch module but is unused in forward().
        self.cls_token = jnp.zeros((1, 1, Dh), jnp.float32)


def householder_orthogonalize(x, y, eps=1e-8):
    xy = jnp.sum(x * y, axis=-1, keepdims=True)
    xx = jnp.sum(x * x, axis=-1, keepdims=True)
    return x, y - (xy / (xx + eps)) * x


def _pick_tb(B, Lk):
    """Batch block so TB*Lk ~ 256 rows, TB | B, and (if possible) grid >= 2."""
    target = max(1, 256 // max(Lk, 1))
    cap = max(1, B // 2)        # keep >= 2 grid steps for v7x megacore
    tb = 1
    for cand in range(1, B + 1):
        if B % cand == 0 and cand <= target and cand <= cap:
            tb = cand
    return tb


# ---------------------------------------------------------------------------
# Forward (Pallas hot path + cheap batch-invariant JAX glue)
# ---------------------------------------------------------------------------
def qkv_ortho_posneg_prompt_forward(params, x):
    """x: [B, prompt_num_s + prompt_num_m, proj_hidd_dim]."""
    B, Lk, Dh = x.shape
    H = params.nhead
    hd = Dh // H
    Lq = params.pos_prompt_len * params.pos_prompt_layers
    E = params.embed_dim
    f32, bf16 = jnp.float32, jnp.bfloat16

    # ---- batch-invariant prep (tiny parameter re-layouts, done once) ----
    # Q of the learned prompt embeddings does not depend on the batch.
    q = params.pos_prompt_embeddings[0] @ params.wq.T + params.bq       # (Lq, Dh)
    q_heads = q.reshape(Lq, H, hd).transpose(1, 0, 2).astype(bf16)      # (H, Lq, hd)

    wk_t = params.wk.T.astype(bf16)                                     # (Dh, Dh)
    wv_t = params.wv.T.astype(bf16)
    bk = params.bk.reshape(1, Dh)                                       # f32
    bv = params.bv.reshape(1, Dh)

    # Fold Wo and the final projection together:
    #   (ctx @ Wo^T + bo) @ Wp^T + bp == ctx @ (Wo^T @ Wp^T) + (bo @ Wp^T + bp)
    wp_t = params.wp.T                                                  # (Dh, E)
    wop_heads = (params.wo.T @ wp_t).reshape(H, hd, E).astype(bf16)     # (H, hd, E)
    bout = params.bo.reshape(1, Dh) @ wp_t + params.bp.reshape(1, E)    # (1, E) f32
    pe = params.props_pe[0]                                             # (Lk, Dh)

    TB = _pick_tb(B, Lk)
    grid = (pl.cdiv(B, TB),)

    kernel = functools.partial(_posneg_prompt_kernel, num_heads=H, head_dim=hd)

    pos_p, neg_p = pl.pallas_call(
        kernel,
        out_shape=(jax.ShapeDtypeStruct((B, Lq, E), f32),
                   jax.ShapeDtypeStruct((B, Lq, E), f32)),
        grid_spec=pltpu.PrefetchScalarGridSpec(
            num_scalar_prefetch=0,
            grid=grid,
            in_specs=[
                pl.BlockSpec((TB, Lk, Dh), lambda b: (b, 0, 0)),   # x (batch block)
                pl.BlockSpec((Lk, Dh),     lambda b: (0, 0)),      # props_pe
                pl.BlockSpec((H, Lq, hd),  lambda b: (0, 0, 0)),   # Q heads (bf16)
                pl.BlockSpec((Dh, Dh),     lambda b: (0, 0)),      # Wk^T (bf16)
                pl.BlockSpec((1, Dh),      lambda b: (0, 0)),      # bk
                pl.BlockSpec((Dh, Dh),     lambda b: (0, 0)),      # Wv^T (bf16)
                pl.BlockSpec((1, Dh),      lambda b: (0, 0)),      # bv
                pl.BlockSpec((H, hd, E),   lambda b: (0, 0, 0)),   # Wo@Wp^T heads
                pl.BlockSpec((1, E),       lambda b: (0, 0)),      # folded bias
            ],
            out_specs=[
                pl.BlockSpec((TB, Lq, E), lambda b: (b, 0, 0)),    # pos prompts
                pl.BlockSpec((TB, Lq, E), lambda b: (b, 0, 0)),    # neg prompts
            ],
        ),
        compiler_params=pltpu.CompilerParams(
            dimension_semantics=("parallel",),
            vmem_limit_bytes=32 * 1024 * 1024),
    )(x, pe, q_heads, wk_t, bk, wv_t, bv, wop_heads, bout)

    if params.ortho_prompt_after:
        pos_p, neg_p = householder_orthogonalize(pos_p, neg_p)
    # Final views are metadata-only reshapes (Lq = layers * len_per_layer).
    if params.pos_prompt_layers > 1:
        pos_p = pos_p.reshape(-1, params.pos_prompt_layers,
                              params.pos_prompt_len, E)
    if params.neg_prompt_layers > 1:
        neg_p = neg_p.reshape(-1, params.neg_prompt_layers,
                              params.neg_prompt_len, E)
    return pos_p, neg_p


# ---------------------------------------------------------------------------
# Pure-JAX f32 reference mirroring the PyTorch math (in-script sanity check)
# ---------------------------------------------------------------------------
def reference_forward(params, x):
    B, Lk, Dh = x.shape
    H = params.nhead
    hd = Dh // H
    Lq = params.pos_prompt_len * params.pos_prompt_layers
    E = params.embed_dim

    xk = x + params.props_pe
    query = jnp.broadcast_to(params.pos_prompt_embeddings, (B, Lq, Dh))
    Q = query @ params.wq.T + params.bq
    K = xk @ params.wk.T + params.bk
    V = xk @ params.wv.T + params.bv
    Qh = Q.reshape(B, Lq, H, hd).transpose(0, 2, 1, 3)
    Kh = K.reshape(B, Lk, H, hd).transpose(0, 2, 1, 3)
    Vh = V.reshape(B, Lk, H, hd).transpose(0, 2, 1, 3)

    scores = jnp.einsum('bhqd,bhkd->bhqk', Qh, Kh) / jnp.sqrt(
        jnp.asarray(hd, jnp.float32))
    pos_w = jax.nn.softmax(scores, axis=-1)
    neg_w = (1.0 - pos_w) / jnp.sum(1.0 - pos_w, axis=-1, keepdims=True)
    neg_w = jnp.minimum(neg_w, 1e-6 / (pos_w + 1e-10))
    neg_w = neg_w / jnp.sum(neg_w, axis=-1, keepdims=True)

    pos_ctx = jnp.einsum('bhqk,bhkd->bhqd', pos_w, Vh)
    neg_ctx = jnp.einsum('bhqk,bhkd->bhqd', neg_w, Vh)
    pos_ctx = pos_ctx.transpose(0, 2, 1, 3).reshape(B, Lq, Dh)
    neg_ctx = neg_ctx.transpose(0, 2, 1, 3).reshape(B, Lq, Dh)

    pos_out = pos_ctx @ params.wo.T + params.bo
    neg_out = neg_ctx @ params.wo.T + params.bo
    pos_p = pos_out @ params.wp.T + params.bp
    neg_p = neg_out @ params.wp.T + params.bp

    if params.ortho_prompt_after:
        pos_p, neg_p = householder_orthogonalize(pos_p, neg_p)
    if params.pos_prompt_layers > 1:
        pos_p = pos_p.reshape(-1, params.pos_prompt_layers,
                              params.pos_prompt_len, E)
    if params.neg_prompt_layers > 1:
        neg_p = neg_p.reshape(-1, params.neg_prompt_layers,
                              params.neg_prompt_len, E)
    return pos_p, neg_p


if __name__ == "__main__":
    # Small shapes: batch=2, key/value seq = prompt_num_s+prompt_num_m = 8,
    # hidden (proj_hidd_dim) = 32, embed_dim = 32, 4 heads (head_dim=8),
    # query length = pos_promptLen * pos_promptLayers = 2*4 = 8.
    # NOTE: production configs should keep embed_dim a multiple of 128 and
    # Lq a multiple of 8 for lane/sublane-dense output stores.
    B = 2
    PROMPT_S, PROMPT_M = 4, 4
    HID = 32          # proj_hidd_dim (cross-attention width)
    EMB = 32          # embed_dim (output prompt width)
    NHEAD = 4
    POS_LEN, POS_LAYERS = 2, 4
    NEG_LEN, NEG_LAYERS = 2, 4

    key = jax.random.PRNGKey(0)
    kp, kx = jax.random.split(key)
    params = QKVOrthoPosNegPromptGParams(
        kp, embed_num=1, embed_dim=EMB, prompt_num_s=PROMPT_S,
        prompt_num_m=PROMPT_M, proj_hidd_dim=HID,
        pos_promptLen=POS_LEN, neg_promptLen=NEG_LEN,
        pos_promptLayers=POS_LAYERS, neg_promptLayers=NEG_LAYERS,
        nhead=NHEAD, ortho_prompt_after=0)

    x = jax.random.normal(kx, (B, PROMPT_S + PROMPT_M, HID), jnp.float32)

    pos_out, neg_out = qkv_ortho_posneg_prompt_forward(params, x)
    pos_out = jax.block_until_ready(pos_out)
    neg_out = jax.block_until_ready(neg_out)

    ref_pos, ref_neg = reference_forward(params, x)
    ref_pos = jax.block_until_ready(ref_pos)
    ref_neg = jax.block_until_ready(ref_neg)

    assert pos_out.shape == (B, POS_LAYERS, POS_LEN, EMB), pos_out.shape
    assert neg_out.shape == (B, NEG_LAYERS, NEG_LEN, EMB), neg_out.shape
    # Tolerances account for bf16 MXU operands + approx EUP reciprocals
    # (the softmax / clamp / renorm structure itself stays f32).
    assert jnp.allclose(pos_out, ref_pos, atol=5e-3, rtol=5e-2), (
        float(jnp.max(jnp.abs(pos_out - ref_pos))))
    assert jnp.allclose(neg_out, ref_neg, atol=5e-3, rtol=5e-2), (
        float(jnp.max(jnp.abs(neg_out - ref_neg))))

    print("KERNEL_OK")
</pallas_src>

<mosaic_0001>
module attributes {stable_mosaic.version = 11 : i64} {
  func.func @_posneg_prompt_kernel(%arg0: i32, %arg1: memref<1x8x32xf32, #tpu.memory_space<vmem>>, %arg2: memref<8x32xf32, #tpu.memory_space<vmem>>, %arg3: memref<4x8x8xbf16, #tpu.memory_space<vmem>>, %arg4: memref<32x32xbf16, #tpu.memory_space<vmem>>, %arg5: memref<1x32xf32, #tpu.memory_space<vmem>>, %arg6: memref<32x32xbf16, #tpu.memory_space<vmem>>, %arg7: memref<1x32xf32, #tpu.memory_space<vmem>>, %arg8: memref<4x8x32xbf16, #tpu.memory_space<vmem>>, %arg9: memref<1x32xf32, #tpu.memory_space<vmem>>, %arg10: memref<1x8x32xf32, #tpu.memory_space<vmem>>, %arg11: memref<1x8x32xf32, #tpu.memory_space<vmem>>) attributes {dimension_semantics = [#tpu.dimension_semantics<parallel>], iteration_bounds = array<i64: 2>, scalar_prefetch = 0 : i64, scratch_operands = 0 : i64, tpu.core_type = #tpu.core_type<tc>, window_params = [{transform_indices = @transform_0, window_bounds = array<i64: 1, 8, 32>}, {pipeline_mode = #tpu.pipeline_mode<synchronous>, transform_indices = @transform_1, window_bounds = array<i64: 8, 32>}, {pipeline_mode = #tpu.pipeline_mode<synchronous>, transform_indices = @transform_2, window_bounds = array<i64: 4, 8, 8>}, {pipeline_mode = #tpu.pipeline_mode<synchronous>, transform_indices = @transform_3, window_bounds = array<i64: 32, 32>}, {pipeline_mode = #tpu.pipeline_mode<synchronous>, transform_indices = @transform_4, window_bounds = array<i64: 1, 32>}, {pipeline_mode = #tpu.pipeline_mode<synchronous>, transform_indices = @transform_5, window_bounds = array<i64: 32, 32>}, {pipeline_mode = #tpu.pipeline_mode<synchronous>, transform_indices = @transform_6, window_bounds = array<i64: 1, 32>}, {pipeline_mode = #tpu.pipeline_mode<synchronous>, transform_indices = @transform_7, window_bounds = array<i64: 4, 8, 32>}, {pipeline_mode = #tpu.pipeline_mode<synchronous>, transform_indices = @transform_8, window_bounds = array<i64: 1, 32>}, {transform_indices = @transform_9, window_bounds = array<i64: 1, 8, 32>}, {transform_indices = @transform_10, window_bounds = array<i64: 1, 8, 32>}]} {
    %c0 = arith.constant 0 : index
    %c0_0 = arith.constant 0 : index
    %c0_1 = arith.constant 0 : index
    %0 = vector.load %arg1[%c0, %c0_0, %c0_1] : memref<1x8x32xf32, #tpu.memory_space<vmem>>, vector<1x8x32xf32>
    %c0_2 = arith.constant 0 : index
    %c0_3 = arith.constant 0 : index
    %1 = vector.load %arg2[%c0_2, %c0_3] : memref<8x32xf32, #tpu.memory_space<vmem>>, vector<8x32xf32>
    %2 = vector.shape_cast %1 : vector<8x32xf32> to vector<1x8x32xf32>
    %3 = arith.addf %0, %2 : vector<1x8x32xf32>
    %4 = arith.truncf %3 : vector<1x8x32xf32> to vector<1x8x32xbf16>
    %5 = vector.shape_cast %4 : vector<1x8x32xbf16> to vector<8x32xbf16>
    %c0_4 = arith.constant 0 : index
    %c0_5 = arith.constant 0 : index
    %6 = vector.load %arg4[%c0_4, %c0_5] : memref<32x32xbf16, #tpu.memory_space<vmem>>, vector<32x32xbf16>
    %cst = arith.constant dense<0.000000e+00> : vector<8x32xf32>
    %7 = tpu.matmul %5, %6, %cst {dimension_numbers = #tpu.dot_dimension_numbers<[1], [0], [0], [1], [0, 0, 1, 1], [], []>} : vector<8x32xbf16>, vector<32x32xbf16>, vector<8x32xf32> -> vector<8x32xf32>
    %c0_6 = arith.constant 0 : index
    %c0_7 = arith.constant 0 : index
    %8 = vector.load %arg5[%c0_6, %c0_7] : memref<1x32xf32, #tpu.memory_space<vmem>>, vector<1x32xf32>
    %9 = vector.broadcast %8 : vector<1x32xf32> to vector<8x32xf32>
    %10 = arith.addf %7, %9 : vector<8x32xf32>
    %11 = arith.truncf %10 : vector<8x32xf32> to vector<8x32xbf16>
    %12 = vector.shape_cast %11 : vector<8x32xbf16> to vector<1x8x32xbf16>
    %c0_8 = arith.constant 0 : index
    %c0_9 = arith.constant 0 : index
    %13 = vector.load %arg6[%c0_8, %c0_9] : memref<32x32xbf16, #tpu.memory_space<vmem>>, vector<32x32xbf16>
    %cst_10 = arith.constant dense<0.000000e+00> : vector<8x32xf32>
    %14 = tpu.matmul %5, %13, %cst_10 {dimension_numbers = #tpu.dot_dimension_numbers<[1], [0], [0], [1], [0, 0, 1, 1], [], []>} : vector<8x32xbf16>, vector<32x32xbf16>, vector<8x32xf32> -> vector<8x32xf32>
    %c0_11 = arith.constant 0 : index
    %c0_12 = arith.constant 0 : index
    %15 = vector.load %arg7[%c0_11, %c0_12] : memref<1x32xf32, #tpu.memory_space<vmem>>, vector<1x32xf32>
    %16 = vector.broadcast %15 : vector<1x32xf32> to vector<8x32xf32>
    %17 = arith.addf %14, %16 : vector<8x32xf32>
    %18 = arith.truncf %17 : vector<8x32xf32> to vector<8x32xbf16>
    %19 = vector.shape_cast %18 : vector<8x32xbf16> to vector<1x8x32xbf16>
    %c0_13 = arith.constant 0 : index
    %c0_14 = arith.constant 0 : index
    %c0_15 = arith.constant 0 : index
    %20 = vector.load %arg3[%c0_13, %c0_14, %c0_15] : memref<4x8x8xbf16, #tpu.memory_space<vmem>>, vector<4x8x8xbf16>
    %21 = vector.shape_cast %20 : vector<4x8x8xbf16> to vector<1x4x8x8xbf16>
    %cst_16 = arith.constant 0.000000e+00 : f32
    %22 = vector.broadcast %cst_16 : f32 to vector<16x32xf32>
    %23 = vector.extract_strided_slice %12 {offsets = [0, 0, 0], sizes = [1, 8, 8], strides = [1, 1, 1]} : vector<1x8x32xbf16> to vector<1x8x8xbf16>
    %24 = vector.extract_strided_slice %19 {offsets = [0, 0, 0], sizes = [1, 8, 8], strides = [1, 1, 1]} : vector<1x8x32xbf16> to vector<1x8x8xbf16>
    %25 = vector.extract_strided_slice %21 {offsets = [0, 0, 0, 0], sizes = [1, 1, 8, 8], strides = [1, 1, 1, 1]} : vector<1x4x8x8xbf16> to vector<1x1x8x8xbf16>
    %26 = vector.shape_cast %25 : vector<1x1x8x8xbf16> to vector<1x8x8xbf16>
    "tpu.trace_start"() <{level = 10 : i32, message = "bqd,bkd->bqk"}> : () -> ()
    %cst_17 = arith.constant dense<0.000000e+00> : vector<1x8x8xf32>
    %27 = tpu.matmul %26, %23, %cst_17 {dimension_numbers = #tpu.dot_dimension_numbers<[2], [2], [1], [1], [0, 0, 0, 1, 1, 1], [0], [0]>} : vector<1x8x8xbf16>, vector<1x8x8xbf16>, vector<1x8x8xf32> -> vector<1x8x8xf32>
    "tpu.trace_stop"() : () -> ()
    %cst_18 = arith.constant 0.353553385 : f32
    %28 = vector.broadcast %cst_18 : f32 to vector<1x8x8xf32>
    %29 = arith.mulf %27, %28 : vector<1x8x8xf32>
    %cst_19 = arith.constant dense<0xFF800000> : vector<1x8xf32>
    %30 = vector.multi_reduction <maximumf>, %29, %cst_19 [2] : vector<1x8x8xf32> to vector<1x8xf32>
    %31 = vector.shape_cast %30 : vector<1x8xf32> to vector<1x8x1xf32>
    %32 = vector.broadcast %31 : vector<1x8x1xf32> to vector<1x8x8xf32>
    %33 = arith.subf %29, %32 : vector<1x8x8xf32>
    %34 = math.exp %33 : vector<1x8x8xf32>
    %cst_20 = arith.constant dense<0.000000e+00> : vector<1x8xf32>
    %35 = vector.multi_reduction <add>, %34, %cst_20 [2] : vector<1x8x8xf32> to vector<1x8xf32>
    %36 = vector.shape_cast %35 : vector<1x8xf32> to vector<1x8x1xf32>
    %37 = tpu.reciprocal %36 {approx = true} : vector<1x8x1xf32> -> vector<1x8x1xf32>
    %38 = vector.broadcast %37 : vector<1x8x1xf32> to vector<1x8x8xf32>
    %39 = arith.mulf %34, %38 : vector<1x8x8xf32>
    %cst_21 = arith.constant 1.000000e+00 : f32
    %40 = vector.broadcast %cst_21 : f32 to vector<1x8x8xf32>
    %41 = arith.subf %40, %39 : vector<1x8x8xf32>
    %cst_22 = arith.constant dense<0.000000e+00> : vector<1x8xf32>
    %42 = vector.multi_reduction <add>, %41, %cst_22 [2] : vector<1x8x8xf32> to vector<1x8xf32>
    %43 = vector.shape_cast %42 : vector<1x8xf32> to vector<1x8x1xf32>
    %44 = tpu.reciprocal %43 {approx = true} : vector<1x8x1xf32> -> vector<1x8x1xf32>
    %45 = vector.broadcast %44 : vector<1x8x1xf32> to vector<1x8x8xf32>
    %46 = arith.mulf %41, %45 : vector<1x8x8xf32>
    %cst_23 = arith.constant 1.000000e-10 : f32
    %47 = vector.broadcast %cst_23 : f32 to vector<1x8x8xf32>
    %48 = arith.addf %39, %47 : vector<1x8x8xf32>
    %cst_24 = arith.constant 9.99999997E-7 : f32
    %49 = vector.broadcast %cst_24 : f32 to vector<1x8x8xf32>
    %50 = arith.divf %49, %48 : vector<1x8x8xf32>
    %51 = arith.minimumf %46, %50 : vector<1x8x8xf32>
    %cst_25 = arith.constant dense<0.000000e+00> : vector<1x8xf32>
    %52 = vector.multi_reduction <add>, %51, %cst_25 [2] : vector<1x8x8xf32> to vector<1x8xf32>
    %53 = vector.shape_cast %52 : vector<1x8xf32> to vector<1x8x1xf32>
    %54 = tpu.reciprocal %53 {approx = true} : vector<1x8x1xf32> -> vector<1x8x1xf32>
    %55 = vector.broadcast %54 : vector<1x8x1xf32> to vector<1x8x8xf32>
    %56 = arith.mulf %51, %55 : vector<1x8x8xf32>
    %57 = tpu.concatenate %39, %56 in 1 : vector<1x8x8xf32>, vector<1x8x8xf32> -> vector<1x16x8xf32>
    %58 = arith.truncf %57 : vector<1x16x8xf32> to vector<1x16x8xbf16>
    "tpu.trace_start"() <{level = 10 : i32, message = "bqk,bkd->bqd"}> : () -> ()
    %cst_26 = arith.constant dense<0.000000e+00> : vector<1x16x8xf32>
    %59 = tpu.matmul %58, %24, %cst_26 {dimension_numbers = #tpu.dot_dimension_numbers<[2], [1], [1], [2], [0, 0, 0, 1, 1, 2], [0], [0]>} : vector<1x16x8xbf16>, vector<1x8x8xbf16>, vector<1x16x8xf32> -> vector<1x16x8xf32>
    "tpu.trace_stop"() : () -> ()
    %60 = arith.truncf %59 : vector<1x16x8xf32> to vector<1x16x8xbf16>
    %61 = vector.shape_cast %60 : vector<1x16x8xbf16> to vector<16x8xbf16>
    %c0_27 = arith.constant 0 : index
    %c0_28 = arith.constant 0 : index
    %c0_29 = arith.constant 0 : index
    %62 = vector.load %arg8[%c0_27, %c0_28, %c0_29] : memref<4x8x32xbf16, #tpu.memory_space<vmem>>, vector<1x8x32xbf16>
    %63 = vector.shape_cast %62 : vector<1x8x32xbf16> to vector<8x32xbf16>
    %cst_30 = arith.constant dense<0.000000e+00> : vector<16x32xf32>
    %64 = tpu.matmul %61, %63, %cst_30 {dimension_numbers = #tpu.dot_dimension_numbers<[1], [0], [0], [1], [0, 0, 1, 1], [], []>} : vector<16x8xbf16>, vector<8x32xbf16>, vector<16x32xf32> -> vector<16x32xf32>
    %65 = arith.addf %22, %64 : vector<16x32xf32>
    %66 = vector.extract_strided_slice %12 {offsets = [0, 0, 8], sizes = [1, 8, 8], strides = [1, 1, 1]} : vector<1x8x32xbf16> to vector<1x8x8xbf16>
    %67 = vector.extract_strided_slice %19 {offsets = [0, 0, 8], sizes = [1, 8, 8], strides = [1, 1, 1]} : vector<1x8x32xbf16> to vector<1x8x8xbf16>
    %68 = vector.extract_strided_slice %21 {offsets = [0, 1, 0, 0], sizes = [1, 1, 8, 8], strides = [1, 1, 1, 1]} : vector<1x4x8x8xbf16> to vector<1x1x8x8xbf16>
    %69 = vector.shape_cast %68 : vector<1x1x8x8xbf16> to vector<1x8x8xbf16>
    "tpu.trace_start"() <{level = 10 : i32, message = "bqd,bkd->bqk"}> : () -> ()
    %cst_31 = arith.constant dense<0.000000e+00> : vector<1x8x8xf32>
    %70 = tpu.matmul %69, %66, %cst_31 {dimension_numbers = #tpu.dot_dimension_numbers<[2], [2], [1], [1], [0, 0, 0, 1, 1, 1], [0], [0]>} : vector<1x8x8xbf16>, vector<1x8x8xbf16>, vector<1x8x8xf32> -> vector<1x8x8xf32>
    "tpu.trace_stop"() : () -> ()
    %cst_32 = arith.constant 0.353553385 : f32
    %71 = vector.broadcast %cst_32 : f32 to vector<1x8x8xf32>
    %72 = arith.mulf %70, %71 : vector<1x8x8xf32>
    %cst_33 = arith.constant dense<0xFF800000> : vector<1x8xf32>
    %73 = vector.multi_reduction <maximumf>, %72, %cst_33 [2] : vector<1x8x8xf32> to vector<1x8xf32>
    %74 = vector.shape_cast %73 : vector<1x8xf32> to vector<1x8x1xf32>
    %75 = vector.broadcast %74 : vector<1x8x1xf32> to vector<1x8x8xf32>
    %76 = arith.subf %72, %75 : vector<1x8x8xf32>
    %77 = math.exp %76 : vector<1x8x8xf32>
    %cst_34 = arith.constant dense<0.000000e+00> : vector<1x8xf32>
    %78 = vector.multi_reduction <add>, %77, %cst_34 [2] : vector<1x8x8xf32> to vector<1x8xf32>
    %79 = vector.shape_cast %78 : vector<1x8xf32> to vector<1x8x1xf32>
    %80 = tpu.reciprocal %79 {approx = true} : vector<1x8x1xf32> -> vector<1x8x1xf32>
    %81 = vector.broadcast %80 : vector<1x8x1xf32> to vector<1x8x8xf32>
    %82 = arith.mulf %77, %81 : vector<1x8x8xf32>
    %cst_35 = arith.constant 1.000000e+00 : f32
    %83 = vector.broadcast %cst_35 : f32 to vector<1x8x8xf32>
    %84 = arith.subf %83, %82 : vector<1x8x8xf32>
    %cst_36 = arith.constant dense<0.000000e+00> : vector<1x8xf32>
    %85 = vector.multi_reduction <add>, %84, %cst_36 [2] : vector<1x8x8xf32> to vector<1x8xf32>
    %86 = vector.shape_cast %85 : vector<1x8xf32> to vector<1x8x1xf32>
    %87 = tpu.reciprocal %86 {approx = true} : vector<1x8x1xf32> -> vector<1x8x1xf32>
    %88 = vector.broadcast %87 : vector<1x8x1xf32> to vector<1x8x8xf32>
    %89 = arith.mulf %84, %88 : vector<1x8x8xf32>
    %cst_37 = arith.constant 1.000000e-10 : f32
    %90 = vector.broadcast %cst_37 : f32 to vector<1x8x8xf32>
    %91 = arith.addf %82, %90 : vector<1x8x8xf32>
    %cst_38 = arith.constant 9.99999997E-7 : f32
    %92 = vector.broadcast %cst_38 : f32 to vector<1x8x8xf32>
    %93 = arith.divf %92, %91 : vector<1x8x8xf32>
    %94 = arith.minimumf %89, %93 : vector<1x8x8xf32>
    %cst_39 = arith.constant dense<0.000000e+00> : vector<1x8xf32>
    %95 = vector.multi_reduction <add>, %94, %cst_39 [2] : vector<1x8x8xf32> to vector<1x8xf32>
    %96 = vector.shape_cast %95 : vector<1x8xf32> to vector<1x8x1xf32>
    %97 = tpu.reciprocal %96 {approx = true} : vector<1x8x1xf32> -> vector<1x8x1xf32>
    %98 = vector.broadcast %97 : vector<1x8x1xf32> to vector<1x8x8xf32>
    %99 = arith.mulf %94, %98 : vector<1x8x8xf32>
    %100 = tpu.concatenate %82, %99 in 1 : vector<1x8x8xf32>, vector<1x8x8xf32> -> vector<1x16x8xf32>
    %101 = arith.truncf %100 : vector<1x16x8xf32> to vector<1x16x8xbf16>
    "tpu.trace_start"() <{level = 10 : i32, message = "bqk,bkd->bqd"}> : () -> ()
    %cst_40 = arith.constant dense<0.000000e+00> : vector<1x16x8xf32>
    %102 = tpu.matmul %101, %67, %cst_40 {dimension_numbers = #tpu.dot_dimension_numbers<[2], [1], [1], [2], [0, 0, 0, 1, 1, 2], [0], [0]>} : vector<1x16x8xbf16>, vector<1x8x8xbf16>, vector<1x16x8xf32> -> vector<1x16x8xf32>
    "tpu.trace_stop"() : () -> ()
    %103 = arith.truncf %102 : vector<1x16x8xf32> to vector<1x16x8xbf16>
    %104 = vector.shape_cast %103 : vector<1x16x8xbf16> to vector<16x8xbf16>
    %c1 = arith.constant 1 : index
    %c0_41 = arith.constant 0 : index
    %c0_42 = arith.constant 0 : index
    %105 = vector.load %arg8[%c1, %c0_41, %c0_42] : memref<4x8x32xbf16, #tpu.memory_space<vmem>>, vector<1x8x32xbf16>
    %106 = vector.shape_cast %105 : vector<1x8x32xbf16> to vector<8x32xbf16>
    %cst_43 = arith.constant dense<0.000000e+00> : vector<16x32xf32>
    %107 = tpu.matmul %104, %106, %cst_43 {dimension_numbers = #tpu.dot_dimension_numbers<[1], [0], [0], [1], [0, 0, 1, 1], [], []>} : vector<16x8xbf16>, vector<8x32xbf16>, vector<16x32xf32> -> vector<16x32xf32>
    %108 = arith.addf %65, %107 : vector<16x32xf32>
    %109 = vector.extract_strided_slice %12 {offsets = [0, 0, 16], sizes = [1, 8, 8], strides = [1, 1, 1]} : vector<1x8x32xbf16> to vector<1x8x8xbf16>
    %110 = vector.extract_strided_slice %19 {offsets = [0, 0, 16], sizes = [1, 8, 8], strides = [1, 1, 1]} : vector<1x8x32xbf16> to vector<1x8x8xbf16>
    %111 = vector.extract_strided_slice %21 {offsets = [0, 2, 0, 0], sizes = [1, 1, 8, 8], strides = [1, 1, 1, 1]} : vector<1x4x8x8xbf16> to vector<1x1x8x8xbf16>
    %112 = vector.shape_cast %111 : vector<1x1x8x8xbf16> to vector<1x8x8xbf16>
    "tpu.trace_start"() <{level = 10 : i32, message = "bqd,bkd->bqk"}> : () -> ()
    %cst_44 = arith.constant dense<0.000000e+00> : vector<1x8x8xf32>
    %113 = tpu.matmul %112, %109, %cst_44 {dimension_numbers = #tpu.dot_dimension_numbers<[2], [2], [1], [1], [0, 0, 0, 1, 1, 1], [0], [0]>} : vector<1x8x8xbf16>, vector<1x8x8xbf16>, vector<1x8x8xf32> -> vector<1x8x8xf32>
    "tpu.trace_stop"() : () -> ()
    %cst_45 = arith.constant 0.353553385 : f32
    %114 = vector.broadcast %cst_45 : f32 to vector<1x8x8xf32>
    %115 = arith.mulf %113, %114 : vector<1x8x8xf32>
    %cst_46 = arith.constant dense<0xFF800000> : vector<1x8xf32>
    %116 = vector.multi_reduction <maximumf>, %115, %cst_46 [2] : vector<1x8x8xf32> to vector<1x8xf32>
    %117 = vector.shape_cast %116 : vector<1x8xf32> to vector<1x8x1xf32>
    %118 = vector.broadcast %117 : vector<1x8x1xf32> to vector<1x8x8xf32>
    %119 = arith.subf %115, %118 : vector<1x8x8xf32>
    %120 = math.exp %119 : vector<1x8x8xf32>
    %cst_47 = arith.constant dense<0.000000e+00> : vector<1x8xf32>
    %121 = vector.multi_reduction <add>, %120, %cst_47 [2] : vector<1x8x8xf32> to vector<1x8xf32>
    %122 = vector.shape_cast %121 : vector<1x8xf32> to vector<1x8x1xf32>
    %123 = tpu.reciprocal %122 {approx = true} : vector<1x8x1xf32> -> vector<1x8x1xf32>
    %124 = vector.broadcast %123 : vector<1x8x1xf32> to vector<1x8x8xf32>
    %125 = arith.mulf %120, %124 : vector<1x8x8xf32>
    %cst_48 = arith.constant 1.000000e+00 : f32
    %126 = vector.broadcast %cst_48 : f32 to vector<1x8x8xf32>
    %127 = arith.subf %126, %125 : vector<1x8x8xf32>
    %cst_49 = arith.constant dense<0.000000e+00> : vector<1x8xf32>
    %128 = vector.multi_reduction <add>, %127, %cst_49 [2] : vector<1x8x8xf32> to vector<1x8xf32>
    %129 = vector.shape_cast %128 : vector<1x8xf32> to vector<1x8x1xf32>
    %130 = tpu.reciprocal %129 {approx = true} : vector<1x8x1xf32> -> vector<1x8x1xf32>
    %131 = vector.broadcast %130 : vector<1x8x1xf32> to vector<1x8x8xf32>
    %132 = arith.mulf %127, %131 : vector<1x8x8xf32>
    %cst_50 = arith.constant 1.000000e-10 : f32
    %133 = vector.broadcast %cst_50 : f32 to vector<1x8x8xf32>
    %134 = arith.addf %125, %133 : vector<1x8x8xf32>
    %cst_51 = arith.constant 9.99999997E-7 : f32
    %135 = vector.broadcast %cst_51 : f32 to vector<1x8x8xf32>
    %136 = arith.divf %135, %134 : vector<1x8x8xf32>
    %137 = arith.minimumf %132, %136 : vector<1x8x8xf32>
    %cst_52 = arith.constant dense<0.000000e+00> : vector<1x8xf32>
    %138 = vector.multi_reduction <add>, %137, %cst_52 [2] : vector<1x8x8xf32> to vector<1x8xf32>
    %139 = vector.shape_cast %138 : vector<1x8xf32> to vector<1x8x1xf32>
    %140 = tpu.reciprocal %139 {approx = true} : vector<1x8x1xf32> -> vector<1x8x1xf32>
    %141 = vector.broadcast %140 : vector<1x8x1xf32> to vector<1x8x8xf32>
    %142 = arith.mulf %137, %141 : vector<1x8x8xf32>
    %143 = tpu.concatenate %125, %142 in 1 : vector<1x8x8xf32>, vector<1x8x8xf32> -> vector<1x16x8xf32>
    %144 = arith.truncf %143 : vector<1x16x8xf32> to vector<1x16x8xbf16>
    "tpu.trace_start"() <{level = 10 : i32, message = "bqk,bkd->bqd"}> : () -> ()
    %cst_53 = arith.constant dense<0.000000e+00> : vector<1x16x8xf32>
    %145 = tpu.matmul %144, %110, %cst_53 {dimension_numbers = #tpu.dot_dimension_numbers<[2], [1], [1], [2], [0, 0, 0, 1, 1, 2], [0], [0]>} : vector<1x16x8xbf16>, vector<1x8x8xbf16>, vector<1x16x8xf32> -> vector<1x16x8xf32>
    "tpu.trace_stop"() : () -> ()
    %146 = arith.truncf %145 : vector<1x16x8xf32> to vector<1x16x8xbf16>
    %147 = vector.shape_cast %146 : vector<1x16x8xbf16> to vector<16x8xbf16>
    %c2 = arith.constant 2 : index
    %c0_54 = arith.constant 0 : index
    %c0_55 = arith.constant 0 : index
    %148 = vector.load %arg8[%c2, %c0_54, %c0_55] : memref<4x8x32xbf16, #tpu.memory_space<vmem>>, vector<1x8x32xbf16>
    %149 = vector.shape_cast %148 : vector<1x8x32xbf16> to vector<8x32xbf16>
    %cst_56 = arith.constant dense<0.000000e+00> : vector<16x32xf32>
    %150 = tpu.matmul %147, %149, %cst_56 {dimension_numbers = #tpu.dot_dimension_numbers<[1], [0], [0], [1], [0, 0, 1, 1], [], []>} : vector<16x8xbf16>, vector<8x32xbf16>, vector<16x32xf32> -> vector<16x32xf32>
    %151 = arith.addf %108, %150 : vector<16x32xf32>
    %152 = vector.extract_strided_slice %12 {offsets = [0, 0, 24], sizes = [1, 8, 8], strides = [1, 1, 1]} : vector<1x8x32xbf16> to vector<1x8x8xbf16>
    %153 = vector.extract_strided_slice %19 {offsets = [0, 0, 24], sizes = [1, 8, 8], strides = [1, 1, 1]} : vector<1x8x32xbf16> to vector<1x8x8xbf16>
    %154 = vector.extract_strided_slice %21 {offsets = [0, 3, 0, 0], sizes = [1, 1, 8, 8], strides = [1, 1, 1, 1]} : vector<1x4x8x8xbf16> to vector<1x1x8x8xbf16>
    %155 = vector.shape_cast %154 : vector<1x1x8x8xbf16> to vector<1x8x8xbf16>
    "tpu.trace_start"() <{level = 10 : i32, message = "bqd,bkd->bqk"}> : () -> ()
    %cst_57 = arith.constant dense<0.000000e+00> : vector<1x8x8xf32>
    %156 = tpu.matmul %155, %152, %cst_57 {dimension_numbers = #tpu.dot_dimension_numbers<[2], [2], [1], [1], [0, 0, 0, 1, 1, 1], [0], [0]>} : vector<1x8x8xbf16>, vector<1x8x8xbf16>, vector<1x8x8xf32> -> vector<1x8x8xf32>
    "tpu.trace_stop"() : () -> ()
    %cst_58 = arith.constant 0.353553385 : f32
    %157 = vector.broadcast %cst_58 : f32 to vector<1x8x8xf32>
    %158 = arith.mulf %156, %157 : vector<1x8x8xf32>
    %cst_59 = arith.constant dense<0xFF800000> : vector<1x8xf32>
    %159 = vector.multi_reduction <maximumf>, %158, %cst_59 [2] : vector<1x8x8xf32> to vector<1x8xf32>
    %160 = vector.shape_cast %159 : vector<1x8xf32> to vector<1x8x1xf32>
    %161 = vector.broadcast %160 : vector<1x8x1xf32> to vector<1x8x8xf32>
    %162 = arith.subf %158, %161 : vector<1x8x8xf32>
    %163 = math.exp %162 : vector<1x8x8xf32>
    %cst_60 = arith.constant dense<0.000000e+00> : vector<1x8xf32>
    %164 = vector.multi_reduction <add>, %163, %cst_60 [2] : vector<1x8x8xf32> to vector<1x8xf32>
    %165 = vector.shape_cast %164 : vector<1x8xf32> to vector<1x8x1xf32>
    %166 = tpu.reciprocal %165 {approx = true} : vector<1x8x1xf32> -> vector<1x8x1xf32>
    %167 = vector.broadcast %166 : vector<1x8x1xf32> to vector<1x8x8xf32>
    %168 = arith.mulf %163, %167 : vector<1x8x8xf32>
    %cst_61 = arith.constant 1.000000e+00 : f32
    %169 = vector.broadcast %cst_61 : f32 to vector<1x8x8xf32>
    %170 = arith.subf %169, %168 : vector<1x8x8xf32>
    %cst_62 = arith.constant dense<0.000000e+00> : vector<1x8xf32>
    %171 = vector.multi_reduction <add>, %170, %cst_62 [2] : vector<1x8x8xf32> to vector<1x8xf32>
    %172 = vector.shape_cast %171 : vector<1x8xf32> to vector<1x8x1xf32>
    %173 = tpu.reciprocal %172 {approx = true} : vector<1x8x1xf32> -> vector<1x8x1xf32>
    %174 = vector.broadcast %173 : vector<1x8x1xf32> to vector<1x8x8xf32>
    %175 = arith.mulf %170, %174 : vector<1x8x8xf32>
    %cst_63 = arith.constant 1.000000e-10 : f32
    %176 = vector.broadcast %cst_63 : f32 to vector<1x8x8xf32>
    %177 = arith.addf %168, %176 : vector<1x8x8xf32>
    %cst_64 = arith.constant 9.99999997E-7 : f32
    %178 = vector.broadcast %cst_64 : f32 to vector<1x8x8xf32>
    %179 = arith.divf %178, %177 : vector<1x8x8xf32>
    %180 = arith.minimumf %175, %179 : vector<1x8x8xf32>
    %cst_65 = arith.constant dense<0.000000e+00> : vector<1x8xf32>
    %181 = vector.multi_reduction <add>, %180, %cst_65 [2] : vector<1x8x8xf32> to vector<1x8xf32>
    %182 = vector.shape_cast %181 : vector<1x8xf32> to vector<1x8x1xf32>
    %183 = tpu.reciprocal %182 {approx = true} : vector<1x8x1xf32> -> vector<1x8x1xf32>
    %184 = vector.broadcast %183 : vector<1x8x1xf32> to vector<1x8x8xf32>
    %185 = arith.mulf %180, %184 : vector<1x8x8xf32>
    %186 = tpu.concatenate %168, %185 in 1 : vector<1x8x8xf32>, vector<1x8x8xf32> -> vector<1x16x8xf32>
    %187 = arith.truncf %186 : vector<1x16x8xf32> to vector<1x16x8xbf16>
    "tpu.trace_start"() <{level = 10 : i32, message = "bqk,bkd->bqd"}> : () -> ()
    %cst_66 = arith.constant dense<0.000000e+00> : vector<1x16x8xf32>
    %188 = tpu.matmul %187, %153, %cst_66 {dimension_numbers = #tpu.dot_dimension_numbers<[2], [1], [1], [2], [0, 0, 0, 1, 1, 2], [0], [0]>} : vector<1x16x8xbf16>, vector<1x8x8xbf16>, vector<1x16x8xf32> -> vector<1x16x8xf32>
    "tpu.trace_stop"() : () -> ()
    %189 = arith.truncf %188 : vector<1x16x8xf32> to vector<1x16x8xbf16>
    %190 = vector.shape_cast %189 : vector<1x16x8xbf16> to vector<16x8xbf16>
    %c3 = arith.constant 3 : index
    %c0_67 = arith.constant 0 : index
    %c0_68 = arith.constant 0 : index
    %191 = vector.load %arg8[%c3, %c0_67, %c0_68] : memref<4x8x32xbf16, #tpu.memory_space<vmem>>, vector<1x8x32xbf16>
    %192 = vector.shape_cast %191 : vector<1x8x32xbf16> to vector<8x32xbf16>
    %cst_69 = arith.constant dense<0.000000e+00> : vector<16x32xf32>
    %193 = tpu.matmul %190, %192, %cst_69 {dimension_numbers = #tpu.dot_dimension_numbers<[1], [0], [0], [1], [0, 0, 1, 1], [], []>} : vector<16x8xbf16>, vector<8x32xbf16>, vector<16x32xf32> -> vector<16x32xf32>
    %194 = arith.addf %151, %193 : vector<16x32xf32>
    %c0_70 = arith.constant 0 : index
    %c0_71 = arith.constant 0 : index
    %195 = vector.load %arg9[%c0_70, %c0_71] : memref<1x32xf32, #tpu.memory_space<vmem>>, vector<1x32xf32>
    %196 = vector.broadcast %195 : vector<1x32xf32> to vector<16x32xf32>
    %197 = arith.addf %194, %196 : vector<16x32xf32>
    %198 = vector.shape_cast %197 : vector<16x32xf32> to vector<1x16x32xf32>
    %199 = vector.extract_strided_slice %198 {offsets = [0, 0, 0], sizes = [1, 8, 32], strides = [1, 1, 1]} : vector<1x16x32xf32> to vector<1x8x32xf32>
    %c0_72 = arith.constant 0 : index
    %c0_73 = arith.constant 0 : index
    %c0_74 = arith.constant 0 : index
    %200 = vector.load %arg10[%c0_72, %c0_73, %c0_74] : memref<1x8x32xf32, #tpu.memory_space<vmem>>, vector<1x8x32xf32>
    tpu.vector_store %arg10[%c0_72, %c0_73, %c0_74], %199 {strides = array<i32>} : memref<1x8x32xf32, #tpu.memory_space<vmem>>, vector<1x8x32xf32>,
    %201 = vector.extract_strided_slice %198 {offsets = [0, 8, 0], sizes = [1, 8, 32], strides = [1, 1, 1]} : vector<1x16x32xf32> to vector<1x8x32xf32>
    %c0_75 = arith.constant 0 : index
    %c0_76 = arith.constant 0 : index
    %c0_77 = arith.constant 0 : index
    %202 = vector.load %arg11[%c0_75, %c0_76, %c0_77] : memref<1x8x32xf32, #tpu.memory_space<vmem>>, vector<1x8x32xf32>
    tpu.vector_store %arg11[%c0_75, %c0_76, %c0_77], %201 {strides = array<i32>} : memref<1x8x32xf32, #tpu.memory_space<vmem>>, vector<1x8x32xf32>,
    return
  }
  func.func @transform_0(%arg0: i32) -> (i32, i32, i32) {
    %c0_i32 = arith.constant 0 : i32
    %c0_i32_0 = arith.constant 0 : i32
    %c0_i32_1 = arith.constant 0 : i32
    return %arg0, %c0_i32, %c0_i32_0 : i32, i32, i32
  }
  func.func @transform_1(%arg0: i32) -> (i32, i32) {
    %c0_i32 = arith.constant 0 : i32
    %c0_i32_0 = arith.constant 0 : i32
    %c0_i32_1 = arith.constant 0 : i32
    return %c0_i32, %c0_i32_0 : i32, i32
  }
  func.func @transform_2(%arg0: i32) -> (i32, i32, i32) {
    %c0_i32 = arith.constant 0 : i32
    %c0_i32_0 = arith.constant 0 : i32
    %c0_i32_1 = arith.constant 0 : i32
    %c0_i32_2 = arith.constant 0 : i32
    return %c0_i32, %c0_i32_0, %c0_i32_1 : i32, i32, i32
  }
  func.func @transform_3(%arg0: i32) -> (i32, i32) {
    %c0_i32 = arith.constant 0 : i32
    %c0_i32_0 = arith.constant 0 : i32
    %c0_i32_1 = arith.constant 0 : i32
    return %c0_i32, %c0_i32_0 : i32, i32
  }
  func.func @transform_4(%arg0: i32) -> (i32, i32) {
    %c0_i32 = arith.constant 0 : i32
    %c0_i32_0 = arith.constant 0 : i32
    %c0_i32_1 = arith.constant 0 : i32
    return %c0_i32, %c0_i32_0 : i32, i32
  }
  func.func @transform_5(%arg0: i32) -> (i32, i32) {
    %c0_i32 = arith.constant 0 : i32
    %c0_i32_0 = arith.constant 0 : i32
    %c0_i32_1 = arith.constant 0 : i32
    return %c0_i32, %c0_i32_0 : i32, i32
  }
  func.func @transform_6(%arg0: i32) -> (i32, i32) {
    %c0_i32 = arith.constant 0 : i32
    %c0_i32_0 = arith.constant 0 : i32
    %c0_i32_1 = arith.constant 0 : i32
    return %c0_i32, %c0_i32_0 : i32, i32
  }
  func.func @transform_7(%arg0: i32) -> (i32, i32, i32) {
    %c0_i32 = arith.constant 0 : i32
    %c0_i32_0 = arith.constant 0 : i32
    %c0_i32_1 = arith.constant 0 : i32
    %c0_i32_2 = arith.constant 0 : i32
    return %c0_i32, %c0_i32_0, %c0_i32_1 : i32, i32, i32
  }
  func.func @transform_8(%arg0: i32) -> (i32, i32) {
    %c0_i32 = arith.constant 0 : i32
    %c0_i32_0 = arith.constant 0 : i32
    %c0_i32_1 = arith.constant 0 : i32
    return %c0_i32, %c0_i32_0 : i32, i32
  }
  func.func @transform_9(%arg0: i32) -> (i32, i32, i32) {
    %c0_i32 = arith.constant 0 : i32
    %c0_i32_0 = arith.constant 0 : i32
    %c0_i32_1 = arith.constant 0 : i32
    return %arg0, %c0_i32, %c0_i32_0 : i32, i32, i32
  }
  func.func @transform_10(%arg0: i32) -> (i32, i32, i32) {
    %c0_i32 = arith.constant 0 : i32
    %c0_i32_0 = arith.constant 0 : i32
    %c0_i32_1 = arith.constant 0 : i32
    return %arg0, %c0_i32, %c0_i32_0 : i32, i32, i32
  }
}

</mosaic_0001>

<bundles_post_ra>
// kernel: tpu_custom_call.1
= control target key start
LH: loop header
LB: loop body
LE: loop exit
PB: predicated region body
PF: predicated region fallthrough
CT: control target
= control target key end

     0   :  { %s2078_s0 = inlined_call_operand.hbm [shape: f32[2,8,32], index: 0, kind: input, shape index: {}]   ;;  %s2079_s1 = inlined_call_operand.hbm [shape: f32[8,32], index: 1, kind: input, shape index: {}]   ;;  %s2080_s2 = inlined_call_operand.hbm [shape: bf16[4,8,8], index: 2, kind: input, shape index: {}]   ;;  %s2081_s3 = inlined_call_operand.hbm [shape: bf16[32,32], index: 3, kind: input, shape index: {}]   ;;  %s2082_s4 = inlined_call_operand.vmem [shape: f32[1,32], index: 4, kind: input, shape index: {}]   ;;  %s2083_s5 = inlined_call_operand.hbm [shape: bf16[32,32], index: 5, kind: input, shape index: {}]   ;;  %s2084_s6 = inlined_call_operand.vmem [shape: f32[1,32], index: 6, kind: input, shape index: {}]   ;;  %s2085_s7 = inlined_call_operand.hbm [shape: bf16[4,8,32], index: 7, kind: input, shape index: {}]   ;;  %s2086_s8 = inlined_call_operand.vmem [shape: f32[1,32], index: 8, kind: input, shape index: {}]   ;;  %s2087_s9 = inlined_call_operand.hbm [shape: f32[2,8,32], index: 9, kind: output, shape index: {0}]   ;;  %s2088_s10 = inlined_call_operand.hbm [shape: f32[2,8,32], index: 10, kind: output, shape index: {1}]  }
   0x1   :  { %2089 = sst [smem:[#allocation22_spill]] %s2078_s0 }
   0x2   :  { %2090 = sst [smem:[#allocation23_spill]] %s2079_s1 }
   0x3   :  { %2091 = sst [smem:[#allocation24_spill]] %s2080_s2 }
   0x4   :  { %2092 = sst [smem:[#allocation25_spill]] %s2081_s3 }
   0x5   :  { %2093 = sst [smem:[#allocation26_spill]] %s2083_s5 }
   0x6   :  { %16 = vsyncpa [#allocation3], 0 }
   0x7   :  { %18 = vsyncpa [#allocation3 + $0x1], 0 }
   0x8   :  { %19 = vsyncpa [#allocation6], 0 }
   0x9   :  { %20 = vsyncpa [#allocation9], 0 }
   0xa   :  { %21 = vsyncpa [#allocation12], 0 }
   0xb   :  { %22 = vsyncpa [#allocation4], 0 }
   0xc   :  { %24 = vsyncpa [#allocation4 + $0x1], 0 }
   0xd   :  { %25 = vsyncpa [#allocation15], 0 }
   0xe   :  { %27 = vsyncpa [#allocation15 + $0x1], 0  ;;  %s1793_s13 = smov 0   ;;  %s1795_s14 = smov 0  }
   0xf   :  { %s1797_s15 = smov 0   ;;  %s1799_s16 = smov 0  }
  0x10 LB: > { %s2094_s1 = sld [smem:[#allocation23_spill]]  ;;  %s1817_s20 = sadd.s32 4294967295, %s1726_s16   ;;  %s1726_s16 = sphi %s1799_s16, %s2109_s16   ;;  %s1722_s15 = sphi %s1797_s15, %s2108_s15   ;;  %s1718_s14 = sphi %s1795_s14, %s2107_s14   ;;  %s1714_s13 = sphi %s1793_s13, %s2106_s13  }
  0x11   : > { %p1228_p0 = scmp.ge.s32.totalorder %s1726_s16, 1  ;;  %p54_p1 = scmp.eq.s32.totalorder %s1817_s20, 0 }
  0x12   : > { %p284_p2 = scmp.lt.s32.totalorder %s1726_s16, 3  ;;  %s1728_s22 = smov [#allocation5]  }
  0x13   : > { %s298_s23 = sshll.u32 %s1728_s22, 4  ;;  %s2096_s3 = sld [smem:[#allocation25_spill]]  ;;  %s299_s23 = int_to_ptr.vmem [resolvable:$true] %s298_s23 }
  0x14   : > { %p1822_p3 = pnand %p1228_p0, %p284_p2  ;;  %s2098_s2 = sld [smem:[#allocation24_spill]] }
  0x15   : > { %s1729_s11 = smov [#allocation8]   ;;  %s1730_s17 = smov 64  }
  0x16   : > { %s296_s19 = sshll.u32 %s2094_s1, 4  ;;  %p1312_p5 = pneg %p1822_p3  ;;  %s297_s19 = int_to_ptr.hbm [resolvable:$true] %s296_s19 }
  0x17   : > { %s323_s12 = sshll.u32 %s1729_s11, 4  ;;  %s1731_s18 = smov 4   ;;  %s324_s12 = int_to_ptr.vmem [resolvable:$true] %s323_s12 }
  0x18   : > { %p1834_p6 = pnand %p1312_p5, %p54_p1  ;;  %s2099_s5 = sld [smem:[#allocation26_spill]] }
  0x19   : > { %s321_s26 = sshll.u32 %s2096_s3, 4  ;;  %s1732_s1 = smov [#allocation7]   ;;  %s322_s26 = int_to_ptr.hbm [resolvable:$true] %s321_s26 }
  0x1a   : > { %s307_s30 = sshll.u32 %s2098_s2, 4  ;;  %s309_s28 = sshll.u32 %s1732_s1, 4  ;;  %s308_s30 = int_to_ptr.hbm [resolvable:$true] %s307_s30  ;;  %s310_s28 = int_to_ptr.vmem [resolvable:$true] %s309_s28 }
  0x1b   : > { %1315 = dma.hbm_to_vmem [thread:$0]  (!%p1834_p6), %s297_s19, 128, %s299_s23, [#allocation6]  }
  0x1c   : > { %1321 = dma.hbm_to_vmem [thread:$0]  (!%p1834_p6), %s322_s26, 256, %s324_s12, [#allocation9], %s1730_s17, %s1730_s17, %s1731_s18  }
  0x1d   : > { %1318 = dma.hbm_to_vmem [thread:$0]  (!%p1834_p6), %s308_s30, 256, %s310_s28, [#allocation6], %s1730_s17, %s1730_s17, %s1731_s18  }
  0x1e   : > { %s338_s25 = sshll.u32 %s2099_s5, 4  ;;  %s1733_s19 = smov [#allocation10]   ;;  %s339_s25 = int_to_ptr.hbm [resolvable:$true] %s338_s25 }
  0x1f   : > { %s340_s23 = sshll.u32 %s1733_s19, 4  ;;  %s355_s11 = sshll.u32 %s2085_s7, 4  ;;  %s341_s23 = int_to_ptr.vmem [resolvable:$true] %s340_s23  ;;  %s356_s11 = int_to_ptr.hbm [resolvable:$true] %s355_s11 }
  0x20   : > { %1324 = dma.hbm_to_vmem [thread:$0]  (!%p1834_p6), %s339_s25, 256, %s341_s23, [#allocation9], %s1730_s17, %s1730_s17, %s1731_s18  }
  0x21   : > { %s1734_s1 = smov [#allocation11]   ;;  %s1227_s30 = sadd.s32 4294967294, %s1726_s16  }
  0x22   : > { %s357_s12 = sshll.u32 %s1734_s1, 4  ;;  %s1859_s22 = sadd.s32 1, %s1726_s16   ;;  %s358_s12 = int_to_ptr.vmem [resolvable:$true] %s357_s12 }
  0x23   : > { %1327 = dma.hbm_to_vmem [thread:$0]  (!%p1834_p6), %s356_s11, 256, %s358_s12, [#allocation12], %s1730_s17, %s1730_s17, %s1731_s18  }
  0x24   : > { %s40_s24 = sadd.s32 1, %s1722_s15  ;;  %s37_s28 = ssub.s32 %s1726_s16, %s1859_s22 }
  0x25   : > { %p47_p7 = scmp.ne.s32.totalorder %s1722_s15, %s1718_s14  ;;  %p38_p8 = scmp.eq.s32.totalorder %s37_s28, 0 }
  0x26   : > { %p48_p9 = scmp.eq.s32.totalorder %s1726_s16, 0  ;;  %p53_p10 = scmp.ne.s32.totalorder %s1718_s14, %s1714_s13 }
  0x27   : > { %p245_p11 = scmp.eq.s32.totalorder %s1817_s20, 1  ;;  %p251_p0 = scmp.eq.s32.totalorder %s1227_s30, 1 }
  0x28   : > { %s1871_s25 = scalar_select %p38_p8, %s1722_s15, %s40_s24  }
  0x29   : > { %p1875_p12 = por %p54_p1, %p53_p10  ;;  %p1879_p13 = por %p245_p11, %p47_p7 }
  0x2a   : > { %p49_p2 = por %p48_p9, %p47_p7  ;;  %s374_s18 = sand.u32 1, %s1722_s15  }
  0x2b   : > { %p1884_p5 = por %p251_p0, %p53_p10  ;;  %p1344_p6 = scmp.lt.s32.totalorder %s1726_s16, 2 }
  0x2c   : > { %s1235_s23 = sshll.u32 %s374_s18, 3  ;;  %s1236_s26 = sshll.u32 %s1726_s16, 3 }
  0x2d   : > { %s2103_s0 = sld [smem:[#allocation22_spill]]  ;;  %s378_s24 = scalar_lea.vmem [#allocation2], %s1235_s23 }
  0x2e   : > { %s386_s28 = sshll.u32 %s378_s24, 4  ;;  %p1893_p8 = pnand %p1344_p6, %p49_p2  ;;  %s387_s28 = int_to_ptr.vmem [resolvable:$true] %s386_s28 }
  0x2f   : > { %s375_s2 = scalar_lea.sflag [#allocation3], %s374_s18 }
  0x30   : > { %p1590_p9 = pneg %p1893_p8 }
  0x33   : > { %s382_s1 = scalar_lea.hbm %s2103_s0, %s1236_s26  ;;  %s1593_s23 = scalar_lea.hbm %s2103_s0, 16 }
  0x34   : > { %s384_s12 = sshll.u32 %s382_s1, 4  ;;  %s385_s12 = int_to_ptr.hbm [resolvable:$true] %s384_s12 }
  0x35   : > { %s1586_s3 = sshra.s32 %s385_s12, 4  ;;  %s1587_s3 = int_to_ptr.hbm [resolvable:$true] %s1586_s3 }
  0x36   : > { %s1588_s5 = scalar_lea.hbm %s1587_s3, 8  ;;  %p1594_p0 = scmp.lt.s32.totalorder %s1587_s3, %s2103_s0 }
  0x37   : > { %p1589_p7 = scmp.ne.s32.totalorder %s1587_s3, %s1588_s5  ;;  %p1595_p2 = scmp.lt.s32.totalorder %s1593_s23, %s1588_s5 }
  0x39   : > { %p1591_p10 = pnand %p1590_p9, %p1589_p7  ;;  %p1596_p6 = por %p1595_p2, %p1594_p0 }
  0x3b   : > { %p1592_p11 = pneg %p1591_p10 }
  0x3d   : > { %p1597_p4 = pnand %p1596_p6, %p1592_p11 }
  0x3f   : > { %1600 = shalt.err (!%p1597_p4)
}
  0x40   : > { %1331 = dma.hbm_to_vmem [thread:$0]  (!%p1893_p8), %s385_s12, 128, %s387_s28, %s375_s2  }
  0x41   : > { %395 = sbr.rel (%p1822_p3) target bundleno = 1991 (0x7c7), region = 56  ;;  %s1910_s18 = sand.u32 (!%p1822_p3), 1, %s1718_s14  }
  0x42   : > { %s1913_s24 = sshll.u32 (!%p1822_p3), %s1910_s18, 3  ;;  %s398_s3 = scalar_lea.sflag (!%p1822_p3), [#allocation3], %s1910_s18 }
  0x43   : > { %s401_s5 = scalar_lea.vmem (!%p1822_p3), [#allocation2], %s1913_s24 }
  0x46   : > { %1689 = dma.done.wait (%p1875_p12), %s398_s3, 128  }
  0x47   : > { %1691 = vsyncadd (%p1875_p12), %s398_s3, 4294967168 }
  0x48   : > { %1693 = dma.done.wait (%p54_p1), [#allocation6], 384  }
  0x49   : > { %1695 = vsyncadd (%p54_p1), [#allocation6], 4294966912 }
  0x4a   : > { %1697 = dma.done.wait (%p54_p1), [#allocation9], 512  }
  0x4b   : > { %1699 = vsyncadd (%p54_p1), [#allocation9], 4294966784 }
  0x4c   : > { %1701 = dma.done.wait (%p54_p1), [#allocation12], 256  }
  0x4d   : > { %1703 = vsyncadd (%p54_p1), [#allocation12], 4294967040  ;;  %v1283_v0 = vld [vmem:[#allocation8 + $0x8] sm:$0xff]  ;;  %v470_v1 = vld [vmem:[%s401_s5] sm:$0xff]  ;;  %vm494_vm0 = vcmask 261120   ;;  %vm550_vm1 = vcmask 64512  }
  0x4e   : > { %v471_v2 = vld [vmem:[#allocation5] sm:$0xff]  ;;  %v1285_v3 = vld [vmem:[#allocation10 + $0x8] sm:$0xff]  ;;  %504 = vmatpush.bf16.msra.mxu0 %v1283_v0  ;;  %v1282_v4 = vld [vmem:[#allocation8] sm:$0xff]  ;;  %s1735_s27 = smov 120   ;;  %s1736_s12 = smov 104   ;;  %vm620_vm2 = vcmask 1043456  }
  0x4f   : > { %v472_v5 = vadd.f32 %v471_v2, %v470_v1  ;;  %538 = vmatpush.bf16.msra.mxu1 %v1285_v3  ;;  %v1284_v6 = vld [vmem:[#allocation10] sm:$0xff]  ;;  %v1393_v8 = vld [vmem:[%s2082_s4] ss:$0 sm:$0xff]  ;;  %v640_v23 = vld [vmem:[#allocation11] sm:$0xf]  ;;  %s1737_s26 = smov 112  }
  0x50   : > { %v546_v18 = vld [vmem:[#allocation7] sm:$0xf]  ;;  %v1394_v19 = vld [vmem:[%s2084_s6] ss:$0 sm:$0xff]  ;;  %v775_v24 = vsel %vm620_vm2, %v640_v23, 0  ;;  %s1278_s29 = sshll.u32 %s1817_s20, 3 }
  0x51   : > { %v473_v7 = vpack.c.bf16 %v472_v5, %v472_v5  ;;  %s1057_s1 = scalar_lea.hbm %s2087_s9, %s1278_s29  ;;  %s461_s2 = scalar_lea.vmem [#allocation13], %s1913_s24 }
  0x52   : > { %505 = vmatpush.bf16.msra.mxu0 %v1282_v4  ;;  %s1059_s21 = sshll.u32 %s461_s2, 4  ;;  %s1071_s28 = scalar_lea.hbm %s2088_s10, %s1278_s29  ;;  %s1060_s21 = int_to_ptr.vmem [resolvable:$true] %s1059_s21 }
  0x53   : > { %539 = vmatpush.bf16.msra.mxu1 %v1284_v6  ;;  %v547_v6 = vld [vmem:[#allocation7 + $0x4] sm:$0xf]  ;;  %s1042_s30 = scalar_lea.sflag [#allocation4], %s1910_s18  ;;  %s1636_s3 = scalar_lea.hbm %s2087_s9, 16 }
  0x55   : > { %1254 = vmatmul.msk.bf16.vlgmr.msra.gmra.mxu0 %vm494_vm0, %v473_v7 }
  0x56   : > { %1263 = vmatmul.msk.bf16.vlgmr.msra.gmra.mxu1 %vm494_vm0, %v473_v7  ;;  %v548_v7 = vld [vmem:[#allocation7 + $0x8] sm:$0xf] }
  0xd2   : > { %v507_v9 = vpop.f32.mrf.mxu0 }
  0xd3   : > { %v508_v10 = vadd.f32 %v1393_v8, %v507_v9  ;;  %v541_v11 = vpop.f32.mrf.mxu1 }
  0xd4   : > { %v542_v20 = vadd.f32 %v1394_v19, %v541_v11  ;;  %v549_v19 = vld [vmem:[#allocation7 + $0xc] sm:$0xf] }
  0xd5   : > { %v511_v12 = vpack.c.bf16 %v508_v10, %v508_v10 }
  0xd6   : > { %v1945_v21 = vpack.c.bf16 %v542_v20, %v542_v20 }
  0xd7   : > { %v642_v13 = vunpack.c.l.b16 %v511_v12  ;;  %v555_v14 = vsel %vm550_vm1, %v511_v12, 0 }
  0xd8   : > { %564 = vmatpush.bf16.xpose.msra.mxu2 %v555_v14  ;;  %v622_v22 = vsel %vm620_vm2, %v1945_v21, 0 }
  0xd9   : > { %v643_v15 = vpack.c.b16 %v642_v13, %v642_v13  ;;  %631 = vmatpush.bf16.msra.mxu3 %v622_v22 }
  0xda   : > { %v509_v16 = vpop.f32.mrf.mxu0 }
  0xdb   : > { %644 = vrot.lane.b32.xlu2 %v643_v15, %s1735_s27  ;;  %v543_v17 = vpop.f32.mrf.mxu1 }
  0xdf   : > { %1264 = vmatmul.msk.bf16.vlgmr.msra.gmra.mxu2 %vm550_vm1, %v546_v18 }
  0xe0   : > { %784 = vmatpush.bf16.msrb.mxu2 %v775_v24 }
  0xe3   : > { %912 = vrot.lane.b32.xlu2 %v643_v15, %s1736_s12 }
 0x135   : > { %v645_v25 = vpop.permute.xlu2 %644 }
 0x136   : > { %v650_v26 = vsel %vm550_vm1, %v645_v25, 0 }
 0x137   : > { %659 = vmatpush.bf16.xpose.msrb.mxu3 %v650_v26 }
 0x13d   : > { %v913_v27 = vpop.permute.xlu2 %912 }
 0x13e   : > { %v918_v28 = vsel %vm550_vm1, %v913_v27, 0 }
 0x13f   : > { %927 = vmatpush.bf16.xpose.msra.mxu2 %v918_v28 }
 0x162   : > { %v566_v29 = vpop.f32.mrf.mxu2 }
 0x163   : > { %v570_v30 = vmul.f32 0.35355338, %v566_v29 }
 0x165   : > { %v571_v31 = vsel %vm550_vm1, %v570_v30, -inf }
 0x166   : > { %572 = vmax.xlane.f32.xlu0 %v571_v31 }
 0x16a   : > { %v568_v32 = vpop.f32.mrf.mxu2 }
 0x1d9   : > { %v573_v33 = vpop.xlane.xlu0 %572 }
 0x1da   : > { %v574_v34 = vsub.f32 %v570_v30, %v573_v33 }
 0x1dc   : > { %v575_v35 = vmul.f32 1.442695, %v574_v34 }
 0x1de   : > { %1396 = vpow2.f32 %v575_v35 }
 0x1e4   : > { %v1397_v36 = vpop.eup %1396 }
 0x1e5   : > { %v577_v37 = vsel %vm550_vm1, %v1397_v36, 0.0 }
 0x1e6   : > { %578 = vadd.xlane.f32.xlu0 %v577_v37 }
 0x1fa   : > { %791 = vrot.lane.b32.xlu0 %v643_v15, %s1737_s26 }
 0x259   : > { %v579_v38 = vpop.xlane.xlu0 %578 }
 0x25a   : > { %1398 = vrcp.f32 %v579_v38 }
 0x260   : > { %v1399_v39 = vpop.eup %1398 }
 0x261   : > { %v581_v40 = vmul.f32 %v1399_v39, %v1397_v36 }
 0x263   : > { %v582_v41 = vsub.f32 1.0, %v581_v40  ;;  %v588_v43 = vadd.f32 1e-10, %v581_v40  ;;  %v610_v63 = vpack.c.bf16 %v581_v40, %v581_v40 }
 0x265   : > { %v583_v42 = vsel %vm550_vm1, %v582_v41, 0.0  ;;  %1400 = vrcp.f32 %v588_v43  ;;  %v600_v49 = vand.u32 2147483648, %v588_v43  ;;  %vm594_vm4 = vweird.f32 %v588_v43 }
 0x266   : > { %584 = vadd.xlane.f32.xlu1 %v583_v42  ;;  %v598_v51 = vand.u32 2147483647, %v588_v43  ;;  %v614_v1 = vunpack.c.l.b16 %v610_v63 }
 0x267   : > { %v601_v53 = vor.u32 1.1754944e-38, %v600_v49 }
 0x268   : > { %vm599_vm6 = vcmp.eq.f32.partialorder %v598_v51, 8.507059e+37 }
 0x26b   : > { %v1401_v44 = vpop.eup %1400 }
 0x26c   : > { %v590_v45 = vmul.f32 %v1401_v44, %v588_v43  ;;  %vm595_vm3 = vweird.f32 %v1401_v44  ;;  %v792_v3 = vpop.permute.xlu0 %791 }
 0x26d   : > { %vm596_vm5 = vmor %vm594_vm4, %vm595_vm3  ;;  %v797_v5 = vsel %vm550_vm1, %v792_v3, 0 }
 0x26e   : > { %v591_v46 = vsub.f32 1.0, %v590_v45 }
 0x270   : > { %v592_v47 = vmul.f32 %v1401_v44, %v591_v46 }
 0x272   : > { %v593_v48 = vadd.f32 %v1401_v44, %v592_v47 }
 0x274   : > { %v597_v52 = vsel %vm596_vm5, %v1401_v44, %v593_v48 }
 0x275   : > { %v602_v54 = vsel %vm599_vm6, %v601_v53, %v597_v52 }
 0x276   : > { %v603_v57 = vmul.f32 1e-06, %v602_v54 }
 0x2d9   : > { %v585_v50 = vpop.xlane.xlu1 %584 }
 0x2da   : > { %1402 = vrcp.f32 %v585_v50 }
 0x2e0   : > { %v1403_v55 = vpop.eup %1402 }
 0x2e1   : > { %v587_v56 = vmul.f32 %v1403_v55, %v582_v41 }
 0x2e3   : > { %v604_v58 = vmin.f32 %v587_v56, %v603_v57  ;;  %v713_v56 = vunpack.c.l.b16 %v1945_v21 }
 0x2e5   : > { %v605_v59 = vsel %vm550_vm1, %v604_v58, 0.0  ;;  %v1984_v57 = vpack.c.b16 %v713_v56, %v713_v56 }
 0x2e6   : > { %606 = vadd.xlane.f32.xlu1 %v605_v59 }
 0x359   : > { %v607_v60 = vpop.xlane.xlu1 %606 }
 0x35a   : > { %1404 = vrcp.f32 %v607_v60 }
 0x360   : > { %v1405_v61 = vpop.eup %1404 }
 0x361   : > { %v609_v62 = vmul.f32 %v1405_v61, %v604_v58 }
 0x363   : > { %v611_v0 = vpack.c.bf16 %v609_v62, %v609_v62 }
 0x365   : > { %v615_v2 = vunpack.c.l.b16 %v611_v0 }
 0x367   : > { %v616_v4 = vpack.c.b16 %v615_v2, %v614_v1 }
 0x369   : > { %1265 = vmatmul.msk.bf16.vlgmr.msra.gmra.mxu3 %vm550_vm1, %v616_v4 }
 0x36a   : > { %806 = vmatpush.bf16.xpose.msra.mxu3 %v797_v5 }
 0x379   : > { %1266 = vmatmul.msk.bf16.vlgmr.msrb.gmra.mxu3 %vm550_vm1, %v547_v6 }
 0x389   : > { %1270 = vmatmul.msk.bf16.vlgmr.msra.gmra.mxu3 %vm550_vm1, %v548_v7 }
 0x3ec   : > { %v633_v8 = vpop.f32.mrf.mxu3 }
 0x3ed   : > { %v638_v9 = vpack.c.bf16 %v633_v8, %v633_v8 }
 0x3ef   : > { %v768_v12 = vunpack.c.l.b16 %v638_v9 }
 0x3f4   : > { %v635_v10 = vpop.f32.mrf.mxu3 }
 0x3f5   : > { %v639_v11 = vpack.c.bf16 %v635_v10, %v635_v10 }
 0x3f7   : > { %v769_v13 = vunpack.c.l.b16 %v639_v11 }
 0x3f9   : > { %v770_v14 = vpack.c.b16 %v769_v13, %v768_v12 }
 0x3fb   : > { %1269 = vmatmul.msk.bf16.vlgmr.msrb.gmra.mxu2 %vm550_vm1, %v770_v14 }
 0x3fc   : > { %v661_v15 = vpop.f32.mrf.mxu3 }
 0x3fd   : > { %v665_v16 = vmul.f32 0.35355338, %v661_v15 }
 0x3ff   : > { %v666_v17 = vsel %vm550_vm1, %v665_v16, -inf }
 0x400   : > { %667 = vmax.xlane.f32.xlu1 %v666_v17 }
 0x404   : > { %v663_v18 = vpop.f32.mrf.mxu3 }
 0x40b   : > { %1273 = vmatmul.msk.bf16.vlgmr.msra.gmra.mxu2 %vm550_vm1, %v549_v19 }
 0x40c   : > { %v808_v20 = vpop.f32.mrf.mxu3 }
 0x40d   : > { %v812_v22 = vmul.f32 0.35355338, %v808_v20 }
 0x40f   : > { %v813_v23 = vsel %vm550_vm1, %v812_v22, -inf }
 0x410   : > { %814 = vmax.xlane.f32.xlu1 %v813_v23 }
 0x414   : > { %v810_v24 = vpop.f32.mrf.mxu3 }
 0x473   : > { %v668_v25 = vpop.xlane.xlu1 %667 }
 0x474   : > { %v669_v26 = vsub.f32 %v665_v16, %v668_v25 }
 0x476   : > { %v670_v27 = vmul.f32 1.442695, %v669_v26 }
 0x478   : > { %1406 = vpow2.f32 %v670_v27 }
 0x47e   : > { %v1407_v28 = vpop.eup %1406  ;;  %v1965_v29 = vpop.f32.mrf.mxu2 }
 0x47f   : > { %v672_v30 = vsel %vm550_vm1, %v1407_v28, 0.0 }
 0x480   : > { %673 = vadd.xlane.f32.xlu1 %v672_v30 }
 0x483   : > { %v815_v31 = vpop.xlane.xlu1 %814 }
 0x484   : > { %v816_v32 = vsub.f32 %v812_v22, %v815_v31 }
 0x486   : > { %v817_v33 = vmul.f32 1.442695, %v816_v32  ;;  %v1968_v34 = vpop.f32.mrf.mxu2 }
 0x488   : > { %1408 = vpow2.f32 %v817_v33 }
 0x48e   : > { %v1409_v35 = vpop.eup %1408  ;;  %v929_v36 = vpop.f32.mrf.mxu2 }
 0x48f   : > { %v933_v37 = vmul.f32 0.35355338, %v929_v36  ;;  %v819_v38 = vsel %vm550_vm1, %v1409_v35, 0.0 }
 0x490   : > { %820 = vadd.xlane.f32.xlu1 %v819_v38 }
 0x491   : > { %v934_v39 = vsel %vm550_vm1, %v933_v37, -inf }
 0x492   : > { %935 = vmax.xlane.f32.xlu2 %v934_v39 }
 0x496   : > { %v931_v40 = vpop.f32.mrf.mxu2 }
 0x4f3   : > { %v674_v41 = vpop.xlane.xlu1 %673 }
 0x4f4   : > { %1410 = vrcp.f32 %v674_v41 }
 0x4fa   : > { %v1411_v42 = vpop.eup %1410 }
 0x4fb   : > { %v1972_v43 = vmul.f32 %v1411_v42, %v1407_v28 }
 0x4fd   : > { %v677_v44 = vsub.f32 1.0, %v1972_v43  ;;  %v683_v59 = vadd.f32 1e-10, %v1972_v43 }
 0x4ff   : > { %v678_v45 = vsel %vm550_vm1, %v677_v44, 0.0  ;;  %v695_v14 = vand.u32 2147483648, %v683_v59  ;;  %vm689_vm12 = vweird.f32 %v683_v59  ;;  %v693_v18 = vand.u32 2147483647, %v683_v59 }
 0x500   : > { %679 = vadd.xlane.f32.xlu1 %v678_v45 }
 0x501   : > { %v696_v26 = vor.u32 1.1754944e-38, %v695_v14  ;;  %vm694_vm14 = vcmp.eq.f32.partialorder %v693_v18, 8.507059e+37  ;;  %v884_v14 = vld [vmem:[#allocation11 + $0x8] sm:$0xf] }
 0x503   : > { %v821_v46 = vpop.xlane.xlu1 %820 }
 0x504   : > { %1412 = vrcp.f32 %v821_v46 }
 0x505   : > { %v936_v47 = vpop.xlane.xlu2 %935 }
 0x506   : > { %v937_v48 = vsub.f32 %v933_v37, %v936_v47 }
 0x508   : > { %v938_v49 = vmul.f32 1.442695, %v937_v48 }
 0x50a   : > { %v1413_v50 = vpop.eup %1412  ;;  %1414 = vpow2.f32 %v938_v49 }
 0x50b   : > { %v1978_v51 = vmul.f32 %v1413_v50, %v1409_v35 }
 0x50d   : > { %v824_v52 = vsub.f32 1.0, %v1978_v51  ;;  %v830_v58 = vadd.f32 1e-10, %v1978_v51 }
 0x50f   : > { %v825_v53 = vsel %vm550_vm1, %v824_v52, 0.0  ;;  %1416 = vrcp.f32 %v830_v58  ;;  %v842_v3 = vand.u32 2147483648, %v830_v58  ;;  %vm836_vm8 = vweird.f32 %v830_v58 }
 0x510   : > { %v1415_v54 = vpop.eup %1414  ;;  %826 = vadd.xlane.f32.xlu2 %v825_v53  ;;  %1418 = vrcp.f32 %v683_v59  ;;  %v840_v5 = vand.u32 2147483647, %v830_v58 }
 0x511   : > { %v940_v55 = vsel %vm550_vm1, %v1415_v54, 0.0  ;;  %v843_v10 = vor.u32 1.1754944e-38, %v842_v3 }
 0x512   : > { %941 = vadd.xlane.f32.xlu0 %v940_v55  ;;  %vm841_vm10 = vcmp.eq.f32.partialorder %v840_v5, 8.507059e+37 }
 0x515   : > { %v1417_v60 = vpop.eup %1416 }
 0x516   : > { %v832_v61 = vmul.f32 %v1417_v60, %v830_v58  ;;  %v1419_v63 = vpop.eup %1418  ;;  %vm837_vm7 = vweird.f32 %v1417_v60 }
 0x517   : > { %v685_v1 = vmul.f32 %v1419_v63, %v683_v59  ;;  %vm838_vm9 = vmor %vm836_vm8, %vm837_vm7  ;;  %vm690_vm11 = vweird.f32 %v1419_v63 }
 0x518   : > { %v833_v62 = vsub.f32 1.0, %v832_v61  ;;  %vm691_vm13 = vmor %vm689_vm12, %vm690_vm11  ;;  %v705_v61 = vpack.c.bf16 %v1972_v43, %v1972_v43 }
 0x519   : > { %v686_v21 = vsub.f32 1.0, %v685_v1 }
 0x51a   : > { %v834_v0 = vmul.f32 %v1417_v60, %v833_v62 }
 0x51b   : > { %v687_v9 = vmul.f32 %v1419_v63, %v686_v21 }
 0x51c   : > { %v835_v2 = vadd.f32 %v1417_v60, %v834_v0 }
 0x51d   : > { %v688_v12 = vadd.f32 %v1419_v63, %v687_v9  ;;  %v740_v9 = vld [vmem:[#allocation11 + $0x4] sm:$0xf] }
 0x51e   : > { %v839_v8 = vsel %vm838_vm9, %v1417_v60, %v835_v2  ;;  %v709_v2 = vunpack.c.l.b16 %v705_v61 }
 0x51f   : > { %v844_v11 = vsel %vm841_vm10, %v843_v10, %v839_v8  ;;  %v692_v24 = vsel %vm691_vm13, %v1419_v63, %v688_v12  ;;  %v750_v10 = vsel %vm620_vm2, %v740_v9, 0 }
 0x520   : > { %v845_v17 = vmul.f32 1e-06, %v844_v11  ;;  %v697_v30 = vsel %vm694_vm14, %v696_v26, %v692_v24  ;;  %759 = vmatpush.bf16.msrb.mxu1 %v750_v10 }
 0x521   : > { %v698_v33 = vmul.f32 1e-06, %v697_v30 }
 0x528   : > { %715 = vrot.lane.b32.xlu2 %v1984_v57, %s1735_s27  ;;  %s1061_s27 = sshll.u32 %s1057_s1, 4  ;;  %s1062_s27 = int_to_ptr.hbm [resolvable:$true] %s1061_s27 }
 0x573   : > { %v680_v6 = vpop.xlane.xlu1 %679 }
 0x583   : > { %v827_v4 = vpop.xlane.xlu2 %826 }
 0x584   : > { %1420 = vrcp.f32 %v827_v4 }
 0x585   : > { %v942_v7 = vpop.xlane.xlu0 %941 }
 0x586   : > { %1422 = vrcp.f32 %v942_v7 }
 0x587   : > { %1424 = vrcp.f32 %v680_v6  ;;  %v852_v6 = vpack.c.bf16 %v1978_v51, %v1978_v51 }
 0x589   : > { %v856_v8 = vunpack.c.l.b16 %v852_v6 }
 0x58a   : > { %v1421_v13 = vpop.eup %1420 }
 0x58b   : > { %v716_v15 = vpop.permute.xlu2 %715  ;;  %v829_v16 = vmul.f32 %v1421_v13, %v824_v52 }
 0x58c   : > { %v1423_v19 = vpop.eup %1422  ;;  %v721_v20 = vsel %vm620_vm2, %v716_v15, 0  ;;  %v894_v15 = vsel %vm620_vm2, %v884_v14, 0 }
 0x58d   : > { %730 = vmatpush.bf16.msrb.mxu0 %v721_v20  ;;  %v846_v22 = vmin.f32 %v829_v16, %v845_v17  ;;  %v1991_v23 = vmul.f32 %v1423_v19, %v1415_v54  ;;  %v1425_v25 = vpop.eup %1424  ;;  %903 = vmatpush.bf16.msra.mxu1 %v894_v15 }
 0x58e   : > { %v682_v32 = vmul.f32 %v1425_v25, %v677_v44 }
 0x58f   : > { %v847_v27 = vsel %vm550_vm1, %v846_v22, 0.0  ;;  %v945_v28 = vsub.f32 1.0, %v1991_v23  ;;  %v951_v37 = vadd.f32 1e-10, %v1991_v23  ;;  %v973_v16 = vpack.c.bf16 %v1991_v23, %v1991_v23 }
 0x590   : > { %848 = vadd.xlane.f32.xlu0 %v847_v27  ;;  %v699_v35 = vmin.f32 %v682_v32, %v698_v33 }
 0x591   : > { %v946_v31 = vsel %vm550_vm1, %v945_v28, 0.0  ;;  %1426 = vrcp.f32 %v951_v37  ;;  %v963_v45 = vand.u32 2147483648, %v951_v37  ;;  %vm957_vm3 = vweird.f32 %v951_v37 }
 0x592   : > { %947 = vadd.xlane.f32.xlu1 %v946_v31  ;;  %v700_v36 = vsel %vm550_vm1, %v699_v35, 0.0  ;;  %v961_v46 = vand.u32 2147483647, %v951_v37  ;;  %v977_v19 = vunpack.c.l.b16 %v973_v16 }
 0x593   : > { %v964_v48 = vor.u32 1.1754944e-38, %v963_v45 }
 0x594   : > { %vm962_vm5 = vcmp.eq.f32.partialorder %v961_v46, 8.507059e+37 }
 0x597   : > { %v1427_v38 = vpop.eup %1426 }
 0x598   : > { %v953_v39 = vmul.f32 %v1427_v38, %v951_v37  ;;  %vm958_vm15 = vweird.f32 %v1427_v38 }
 0x599   : > { %vm959_vm4 = vmor %vm957_vm3, %vm958_vm15 }
 0x59a   : > { %701 = vadd.xlane.f32.xlu1 %v700_v36  ;;  %v954_v40 = vsub.f32 1.0, %v953_v39 }
 0x59c   : > { %v955_v41 = vmul.f32 %v1427_v38, %v954_v40 }
 0x59e   : > { %v956_v42 = vadd.f32 %v1427_v38, %v955_v41 }
 0x5a0   : > { %v960_v47 = vsel %vm959_vm4, %v1427_v38, %v956_v42  ;;  %v1005_v38 = vld [vmem:[#allocation11 + $0xc] sm:$0xf] }
 0x5a1   : > { %v965_v49 = vsel %vm962_vm5, %v964_v48, %v960_v47  ;;  %v1015_v39 = vsel %vm620_vm2, %v1005_v38, 0 }
 0x5a2   : > { %v966_v54 = vmul.f32 1e-06, %v965_v49 }
 0x5a4   : > { %859 = vrot.lane.b32.xlu0 %v1984_v57, %s1737_s26  ;;  %s1630_s26 = sshra.s32 %s1062_s27, 4  ;;  %s1631_s26 = int_to_ptr.hbm [resolvable:$true] %s1630_s26 }
 0x5a5   : > { %s1632_s23 = scalar_lea.hbm %s1631_s26, 8  ;;  %p1637_p12 = scmp.lt.s32.totalorder %s1631_s26, %s2087_s9 }
 0x5a6   : > { %p1633_p1 = scmp.ne.s32.totalorder %s1631_s26, %s1632_s23  ;;  %p1638_p8 = scmp.lt.s32.totalorder %s1636_s3, %s1632_s23 }
 0x5a8   : > { %p1634_p3 = pnand %p1633_p1, %p1879_p13  ;;  %p1639_p7 = por %p1638_p8, %p1637_p12 }
 0x5aa   : > { %p1635_p4 = pneg %p1634_p3 }
 0x5ac   : > { %p1640_p9 = pnand %p1639_p7, %p1635_p4 }
 0x603   : > { %v849_v55 = vpop.xlane.xlu0 %848 }
 0x605   : > { %v948_v44 = vpop.xlane.xlu1 %947 }
 0x606   : > { %1428 = vrcp.f32 %v948_v44 }
 0x60c   : > { %v1429_v50 = vpop.eup %1428 }
 0x60d   : > { %v702_v52 = vpop.xlane.xlu1 %701  ;;  %v950_v53 = vmul.f32 %v1429_v50, %v945_v28 }
 0x60e   : > { %1430 = vrcp.f32 %v702_v52 }
 0x60f   : > { %v967_v56 = vmin.f32 %v950_v53, %v966_v54  ;;  %1432 = vrcp.f32 %v849_v55  ;;  %v1395_v54 = vld [vmem:[%s2086_s8] ss:$0 sm:$0xff] }
 0x611   : > { %v968_v58 = vsel %vm550_vm1, %v967_v56, 0.0 }
 0x612   : > { %969 = vadd.xlane.f32.xlu1 %v968_v58 }
 0x614   : > { %v1431_v59 = vpop.eup %1430 }
 0x615   : > { %v704_v60 = vmul.f32 %v1431_v59, %v699_v35  ;;  %v1433_v3 = vpop.eup %1432 }
 0x616   : > { %v860_v62 = vpop.permute.xlu0 %859  ;;  %v851_v4 = vmul.f32 %v1433_v3, %v846_v22 }
 0x617   : > { %v706_v63 = vpack.c.bf16 %v704_v60, %v704_v60  ;;  %v865_v0 = vsel %vm620_vm2, %v860_v62, 0 }
 0x618   : > { %874 = vmatpush.bf16.msra.mxu0 %v865_v0  ;;  %v853_v5 = vpack.c.bf16 %v851_v4, %v851_v4 }
 0x619   : > { %v710_v1 = vunpack.c.l.b16 %v706_v63 }
 0x61a   : > { %v857_v7 = vunpack.c.l.b16 %v853_v5 }
 0x61b   : > { %v711_v21 = vpack.c.b16 %v710_v1, %v709_v2 }
 0x61c   : > { %v858_v43 = vpack.c.b16 %v857_v7, %v856_v8 }
 0x61d   : > { %1267 = vmatmul.msk.bf16.vlgmr.msrb.gmra.mxu0 %vm550_vm1, %v711_v21 }
 0x61e   : > { %1024 = vmatpush.bf16.msrb.mxu0 %v1015_v39 }
 0x62b   : > { %980 = vrot.lane.b32.xlu1 %v1984_v57, %s1736_s12 }
 0x62d   : > { %1271 = vmatmul.msk.bf16.vlgmr.msra.gmra.mxu0 %vm550_vm1, %v858_v43 }
 0x685   : > { %v970_v11 = vpop.xlane.xlu1 %969 }
 0x686   : > { %1434 = vrcp.f32 %v970_v11 }
 0x68c   : > { %v1435_v12 = vpop.eup %1434 }
 0x68d   : > { %v972_v13 = vmul.f32 %v1435_v12, %v967_v56 }
 0x68f   : > { %v974_v51 = vpack.c.bf16 %v972_v13, %v972_v13 }
 0x691   : > { %v978_v57 = vunpack.c.l.b16 %v974_v51 }
 0x693   : > { %v979_v22 = vpack.c.b16 %v978_v57, %v977_v19 }
 0x69a   : > { %v732_v17 = vpop.f32.mrf.mxu0 }
 0x69b   : > { %v737_v24 = vpack.c.bf16 %v732_v17, %v732_v17 }
 0x69d   : > { %v981_v18 = vpop.permute.xlu1 %980  ;;  %v743_v27 = vunpack.c.l.b16 %v737_v24 }
 0x69e   : > { %v986_v20 = vsel %vm620_vm2, %v981_v18, 0 }
 0x69f   : > { %995 = vmatpush.bf16.msrb.mxu3 %v986_v20 }
 0x6a2   : > { %v734_v25 = vpop.f32.mrf.mxu0  ;;  %1274 = vmatmul.msk.bf16.vlgmr.msrb.gmra.mxu3 %vm550_vm1, %v979_v22 }
 0x6a3   : > { %v738_v26 = vpack.c.bf16 %v734_v25, %v734_v25 }
 0x6a5   : > { %v744_v28 = vunpack.c.l.b16 %v738_v26 }
 0x6a7   : > { %v745_v30 = vpack.c.b16 %v744_v28, %v743_v27 }
 0x6a9   : > { %1268 = vmatmul.msk.bf16.vlgmr.msrb.gmra.mxu1 %vm550_vm1, %v745_v30 }
 0x6aa   : > { %v876_v31 = vpop.f32.mrf.mxu0 }
 0x6ab   : > { %v881_v23 = vpack.c.bf16 %v876_v31, %v876_v31 }
 0x6ad   : > { %v887_v35 = vunpack.c.l.b16 %v881_v23 }
 0x6b2   : > { %v878_v32 = vpop.f32.mrf.mxu0 }
 0x6b3   : > { %v882_v33 = vpack.c.bf16 %v878_v32, %v878_v32 }
 0x6b5   : > { %v888_v36 = vunpack.c.l.b16 %v882_v33 }
 0x6b7   : > { %v889_v37 = vpack.c.b16 %v888_v36, %v887_v35 }
 0x6b9   : > { %1272 = vmatmul.msk.bf16.vlgmr.msra.gmra.mxu1 %vm550_vm1, %v889_v37 }
 0x725   : > { %v997_v40 = vpop.f32.mrf.mxu3 }
 0x726   : > { %v1002_v41 = vpack.c.bf16 %v997_v40, %v997_v40  ;;  %v761_v48 = vpop.f32.mrf.mxu1 }
 0x727   : > { %v787_v52 = vadd.f32 %v1965_v29, %v761_v48 }
 0x728   : > { %v1008_v44 = vunpack.c.l.b16 %v1002_v41 }
 0x72d   : > { %v999_v42 = vpop.f32.mrf.mxu3 }
 0x72e   : > { %v1003_v45 = vpack.c.bf16 %v999_v42, %v999_v42  ;;  %v763_v49 = vpop.f32.mrf.mxu1 }
 0x72f   : > { %v789_v59 = vadd.f32 %v1968_v34, %v763_v49 }
 0x730   : > { %v1009_v46 = vunpack.c.l.b16 %v1003_v45 }
 0x732   : > { %v1010_v47 = vpack.c.b16 %v1009_v46, %v1008_v44 }
 0x734   : > { %1275 = vmatmul.msk.bf16.vlgmr.msrb.gmra.mxu0 %vm550_vm1, %v1010_v47 }
 0x736   : > { %v905_v50 = vpop.f32.mrf.mxu1 }
 0x737   : > { %v910_v53 = vadd.f32 %v905_v50, %v787_v52 }
 0x73e   : > { %v907_v29 = vpop.f32.mrf.mxu1 }
 0x7b1   : > { %v1026_v55 = vpop.f32.mrf.mxu0 }
 0x7b2   : > { %v1031_v56 = vadd.f32 %v1026_v55, %v910_v53 }
 0x7b4   : > { %v1037_v58 = vadd.f32 %v1395_v54, %v1031_v56 }
 0x7b6   : > { %1039 = vst.msk [vmem:[%s461_s2] sm:$0xff] %vm494_vm0, %v1037_v58 }
 0x7b7   : > { %1643 = shalt.err (!%p1640_p9)
}
 0x7b8   : > { %1308 = dma.vmem_to_hbm [thread:$0]  (%p1879_p13), %s1060_s21, 128, %s1062_s27, %s1042_s30   ;;  %v911_v34 = vadd.f32 %v907_v29, %v789_v59 }
 0x7b9   : > { %v1028_v60 = vpop.f32.mrf.mxu0  ;;  %s468_s29 = scalar_lea.vmem [#allocation14], %s1913_s24  ;;  %s1075_s20 = sshll.u32 %s1071_s28, 4  ;;  %s1076_s20 = int_to_ptr.hbm [resolvable:$true] %s1075_s20 }
 0x7ba   : > { %s1073_s2 = sshll.u32 %s468_s29, 4  ;;  %v1032_v61 = vadd.f32 %v1028_v60, %v911_v34  ;;  %s1047_s0 = scalar_lea.sflag [#allocation15], %s1910_s18  ;;  %s1074_s2 = int_to_ptr.vmem [resolvable:$true] %s1073_s2 }
 0x7bb   : > { %s1658_s12 = sshra.s32 %s1076_s20, 4  ;;  %s1664_s24 = scalar_lea.hbm %s2088_s10, 16  ;;  %s1659_s12 = int_to_ptr.hbm [resolvable:$true] %s1658_s12 }
 0x7bc   : > { %v1038_v62 = vadd.f32 %v1395_v54, %v1032_v61  ;;  %s1660_s26 = scalar_lea.hbm %s1659_s12, 8  ;;  %p1665_p2 = scmp.lt.s32.totalorder %s1659_s12, %s2088_s10 }
 0x7bd   : > { %p1661_p10 = scmp.ne.s32.totalorder %s1659_s12, %s1660_s26  ;;  %p1666_p6 = scmp.lt.s32.totalorder %s1664_s24, %s1660_s26 }
 0x7be   : > { %1040 = vst.msk [vmem:[%s468_s29] sm:$0xff] %vm494_vm0, %v1038_v62 }
 0x7bf   : > { %p1662_p11 = pnand %p1661_p10, %p1879_p13  ;;  %p1667_p1 = por %p1666_p6, %p1665_p2 }
 0x7c1   : > { %p1663_p0 = pneg %p1662_p11 }
 0x7c3   : > { %p1668_p3 = pnand %p1667_p1, %p1663_p0 }
 0x7c5   : > { %1671 = shalt.err (!%p1668_p3)
}
 0x7c6   : > { %1309 = dma.vmem_to_hbm [thread:$0]  (%p1879_p13), %s1074_s2, 128, %s1076_s20, %s1047_s0  }
 0x7c7 PF: > { %s1087_s18 = sand.u32 1, %s1714_s13   ;;  %p2105_p4 = scmp.ge.s32.totalorder %s1726_s16, 2 }
 0x7c8   : > { %s1088_s23 = scalar_lea.sflag [#allocation4], %s1087_s18 }
 0x7c9   : > { %p1333_p12 = pnand %p2105_p4, %p1884_p5 }
 0x7cb   : > { %p1334_p8 = pneg %p1333_p12 }
 0x7cd   : > { %1705 = dma.done.wait (%p1334_p8), %s1088_s23, 128  }
 0x7ce   : > { %1707 = vsyncadd (%p1334_p8), %s1088_s23, 4294967168  ;;  %s1098_s11 = scalar_lea.sflag [#allocation15], %s1087_s18 }
 0x7cf   : > { %1709 = dma.done.wait (%p1334_p8), %s1098_s11, 128  }
 0x7d0   : > { %1711 = vsyncadd (%p1334_p8), %s1098_s11, 4294967168  ;;  %p30_p13 = scmp.ge.s32.totalorder %s1859_s22, 4   ;;  %s2106_s13 = smov %s1718_s14 }
 0x7d1   : > { %s2107_s14 = smov %s1722_s15  ;;  %s2108_s15 = smov %s1871_s25 }
 0x7d2   : > { %s2109_s16 = smov %s1859_s22  ;;  %32 = sbr.rel (!%p30_p13) target bundleno = 16 (0x10), region = 141 }
 0x7d7   :  { %1104 = vsyncpa [#allocation3], 1 }
 0x7d8   :  { %1106 = vsyncpa [#allocation3 + $0x1], 1 }
 0x7d9   :  { %1107 = vsyncpa [#allocation6], 1 }
 0x7da   :  { %1108 = vsyncpa [#allocation9], 1 }
 0x7db   :  { %1109 = vsyncpa [#allocation12], 1 }
 0x7dc   :  { %1110 = vsyncpa [#allocation4], 1 }
 0x7dd   :  { %1112 = vsyncpa [#allocation4 + $0x1], 1 }
 0x7de   :  { %1113 = vsyncpa [#allocation15], 1 }
 0x7df   :  { %1115 = vsyncpa [#allocation15 + $0x1], 1 }

</bundles_post_ra>
